<compile_context>
chip_gen: v6e
topology: v6e:2x2x1
jax: 0.10.0
libtpu: 0.0.40
codegen_flags: <defaults>
</compile_context>

<pallas_src>
import functools

import jax
import jax.numpy as jnp
import numpy as np
from jax.experimental import pallas as pl
from jax.experimental.pallas import tpu as pltpu


def _round_up(x, m):
    return -(-x // m) * m


# ----------------------------------------------------------------------------
# Fused Pallas kernel: layer1 (+BN+ReLU) -> layer2 -> final projection
# ----------------------------------------------------------------------------
def _mixhop_fused_kernel(x_ref, a_ref, w1_ref, b1_ref, shift1_ref,
                         w2_ref, b2_ref, fw_ref, fb_ref, o_ref,
                         s1_ref, s2_ref, *, hops, g1, g2):
    """Slab layout: hop-DESCENDING groups, each zero-padded to g (multiple of
    128) columns, so slab columns [k*g : k*g + real_width] hold
    A^(hops-k) @ (x @ W_{hops-k} + b_{hops-k})."""
    a = a_ref[...]  # bf16 adjacency, resident for all four A applications

    # ---- Layer 1: one wide GEMM over all hop groups (BN scale pre-folded).
    s1_ref[...] = (jnp.dot(x_ref[...], w1_ref[...],
                           preferred_element_type=jnp.float32)
                   + b1_ref[...]).astype(s1_ref.dtype)
    # Shrinking-prefix A-propagation: the prefix of width k*g1 holds exactly
    # the hop groups that still need >= 1 more application of A.
    for width in range(hops * g1, 0, -g1):
        s1_ref[:, :width] = jnp.dot(a, s1_ref[:, :width],
                                    preferred_element_type=jnp.float32
                                    ).astype(s1_ref.dtype)
    # BN shift + ReLU epilogue (scale already folded into w1/b1).
    # TODO(synk): F.dropout is stochastic; identity here (inference mode).
    s1_ref[...] = jnp.maximum(
        s1_ref[...].astype(jnp.float32) + shift1_ref[...], 0.0
    ).astype(s1_ref.dtype)

    # ---- Layer 2 (final MixHopLayer), same structure.
    s2_ref[...] = (jnp.dot(s1_ref[...], w2_ref[...],
                           preferred_element_type=jnp.float32)
                   + b2_ref[...]).astype(s2_ref.dtype)
    for width in range(hops * g2, 0, -g2):
        s2_ref[:, :width] = jnp.dot(a, s2_ref[:, :width],
                                    preferred_element_type=jnp.float32
                                    ).astype(s2_ref.dtype)

    # ---- Fused final projection, lane-padded (128-wide) output store.
    proj = jnp.dot(s2_ref[...], fw_ref[...],
                   preferred_element_type=jnp.float32) + fb_ref[...]
    o_ref[...] = proj.astype(o_ref.dtype)


# ----------------------------------------------------------------------------
# pallas_call wrapper
# ----------------------------------------------------------------------------
def mixhop_forward(x, adj, params):
    kp = params["kernel"]
    hops = params["hops"]
    n, din = x.shape
    g1, g2, n_pad = kp["g1"], kp["g2"], kp["n_pad"]
    c1, c2 = (hops + 1) * g1, (hops + 1) * g2

    xb = x.astype(jnp.bfloat16)
    ab = adj.astype(jnp.bfloat16)
    inputs = (xb, ab, kp["w1"], kp["b1"], kp["shift1"],
              kp["w2"], kp["b2"], kp["fw"], kp["fb"])

    # Cost estimate: two wide GEMMs + shrinking-prefix A-propagation + proj.
    prop_flops = n * n * (g1 + g2) * hops * (hops + 1)
    flops = (2 * n * din * c1 + 2 * n * c1 * c2 + 2 * n * c2 * n_pad
             + prop_flops + 4 * n * c1)
    in_bytes = sum(int(a.size) * a.dtype.itemsize for a in inputs)
    out_bytes = n * n_pad * 2
    scratch_bytes = n * c1 * 2 + n * c2 * 2
    resident = in_bytes + out_bytes + scratch_bytes
    vmem_limit = int(min(64 * 2**20, max(32 * 2**20, 2 * resident + (4 << 20))))

    kernel = functools.partial(_mixhop_fused_kernel, hops=hops, g1=g1, g2=g2)
    out = pl.pallas_call(
        kernel,
        out_shape=jax.ShapeDtypeStruct((n, n_pad), jnp.bfloat16),
        scratch_shapes=[pltpu.VMEM((n, c1), jnp.bfloat16),
                        pltpu.VMEM((n, c2), jnp.bfloat16)],
        compiler_params=pltpu.CompilerParams(vmem_limit_bytes=vmem_limit),
        cost_estimate=pl.CostEstimate(flops=int(flops), transcendentals=0,
                                      bytes_accessed=int(in_bytes + out_bytes)),
    )(*inputs)
    return out[:, :params["out_channels"]].astype(jnp.float32)


# ----------------------------------------------------------------------------
# Parameters (natural reference layout + padded/permuted kernel layout)
# ----------------------------------------------------------------------------
def _init_linear(key, fan_in, fan_out):
    kw, kb = jax.random.split(key)
    bound = 1.0 / float(np.sqrt(fan_in))
    w = jax.random.uniform(kw, (fan_in, fan_out), jnp.float32, -bound, bound)
    b = jax.random.uniform(kb, (fan_out,), jnp.float32, -bound, bound)
    return w, b


def init_mixhop_params(key, in_channels, hidden_channels, out_channels,
                       num_layers=2, hops=2):
    assert num_layers == 2, "fused kernel specialised to the default 2-layer MixHop"
    # TODO(synk): generalize the fused kernel to num_layers > 2 (loop of hidden layers).

    # Layer 1 / layer 2 per-hop Linears (natural PyTorch layout, f32).
    ws1, bs1, ws2, bs2 = [], [], [], []
    c_hidden = hidden_channels * (hops + 1)
    for _ in range(hops + 1):
        key, sub = jax.random.split(key)
        w, b = _init_linear(sub, in_channels, hidden_channels)
        ws1.append(w); bs1.append(b)
    for _ in range(hops + 1):
        key, sub = jax.random.split(key)
        w, b = _init_linear(sub, c_hidden, out_channels)
        ws2.append(w); bs2.append(b)

    # BatchNorm1d (inference, fresh running stats): scale/shift per channel.
    eps = 1e-5
    gamma = jnp.ones((c_hidden,), jnp.float32)
    beta = jnp.zeros((c_hidden,), jnp.float32)
    running_mean = jnp.zeros((c_hidden,), jnp.float32)
    running_var = jnp.ones((c_hidden,), jnp.float32)
    scale = gamma / jnp.sqrt(running_var + eps)
    shift = beta - running_mean * scale

    # Final projection.
    key, sub = jax.random.split(key)
    fw, fb = _init_linear(sub, out_channels * (hops + 1), out_channels)

    ref = {"convs": [(ws1, bs1), (ws2, bs2)],
           "bn": (scale.reshape(1, -1), shift.reshape(1, -1)),
           "final": (fw, fb)}

    # ---- Kernel layout: hop-descending groups, each padded to 128 lanes,
    #      BN scale folded into layer-1 weights/bias.
    g1 = _round_up(hidden_channels, 128)
    g2 = _round_up(out_channels, 128)
    n_pad = _round_up(out_channels, 128)
    c1 = (hops + 1) * g1
    c2 = (hops + 1) * g2

    scale_np = np.asarray(scale)
    shift_np = np.asarray(shift)

    w1_cat = np.zeros((in_channels, c1), np.float32)
    b1_cat = np.zeros((1, c1), np.float32)
    shift1 = np.zeros((1, c1), np.float32)
    for g in range(hops + 1):
        hop = hops - g
        s_hop = scale_np[hop * hidden_channels:(hop + 1) * hidden_channels]
        w1_cat[:, g * g1:g * g1 + hidden_channels] = np.asarray(ws1[hop]) * s_hop[None, :]
        b1_cat[0, g * g1:g * g1 + hidden_channels] = np.asarray(bs1[hop]) * s_hop
        shift1[0, g * g1:g * g1 + hidden_channels] = \
            shift_np[hop * hidden_channels:(hop + 1) * hidden_channels]

    # Map padded layer-1 slab column -> natural layer-2 input channel (-1 = zero pad).
    row_idx = np.full((c1,), -1, np.int64)
    for g in range(hops + 1):
        hop = hops - g
        row_idx[g * g1:g * g1 + hidden_channels] = \
            np.arange(hop * hidden_channels, (hop + 1) * hidden_channels)
    valid = np.where(row_idx >= 0)[0]

    w2_cat = np.zeros((c1, c2), np.float32)
    b2_cat = np.zeros((1, c2), np.float32)
    for g in range(hops + 1):
        hop = hops - g
        w2_cat[valid, g * g2:g * g2 + out_channels] = np.asarray(ws2[hop])[row_idx[valid], :]
        b2_cat[0, g * g2:g * g2 + out_channels] = np.asarray(bs2[hop])

    fw_np, fb_np = np.asarray(fw), np.asarray(fb)
    fw_pad = np.zeros((c2, n_pad), np.float32)
    fb_pad = np.zeros((1, n_pad), np.float32)
    for g in range(hops + 1):
        hop = hops - g
        fw_pad[g * g2:g * g2 + out_channels, :out_channels] = \
            fw_np[hop * out_channels:(hop + 1) * out_channels, :]
    fb_pad[0, :out_channels] = fb_np

    ker = {"w1": jnp.asarray(w1_cat, jnp.bfloat16),
           "b1": jnp.asarray(b1_cat, jnp.float32),
           "shift1": jnp.asarray(shift1, jnp.float32),
           "w2": jnp.asarray(w2_cat, jnp.bfloat16),
           "b2": jnp.asarray(b2_cat, jnp.float32),
           "fw": jnp.asarray(fw_pad, jnp.bfloat16),
           "fb": jnp.asarray(fb_pad, jnp.float32),
           "g1": g1, "g2": g2, "n_pad": n_pad}

    return {"kernel": ker, "ref": ref, "out_channels": out_channels, "hops": hops}


# ----------------------------------------------------------------------------
# Pure-jnp reference (natural PyTorch hop order, same bf16/f32 arithmetic)
# ----------------------------------------------------------------------------
def reference_forward(x, adj, params):
    hops = params["hops"]
    rp = params["ref"]
    ab = adj.astype(jnp.bfloat16)

    def layer(h_bf16, ws, bs):
        outs = []
        for j in range(hops + 1):
            y = jnp.dot(h_bf16, ws[j].astype(jnp.bfloat16),
                        preferred_element_type=jnp.float32) + bs[j]
            for _ in range(j):
                y = jnp.dot(ab, y.astype(jnp.bfloat16),
                            preferred_element_type=jnp.float32)
            outs.append(y)
        return jnp.concatenate(outs, axis=1)

    (ws1, bs1), (ws2, bs2) = rp["convs"]
    scale, shift = rp["bn"]
    y = layer(x.astype(jnp.bfloat16), ws1, bs1)
    y = jnp.maximum(y * scale + shift, 0.0)
    y2 = layer(y.astype(jnp.bfloat16), ws2, bs2)
    fw, fb = rp["final"]
    return jnp.dot(y2.astype(jnp.bfloat16), fw.astype(jnp.bfloat16),
                   preferred_element_type=jnp.float32) + fb


def gcn_norm_dense(key, n):
    """Random symmetric graph + self loops + symmetric GCN normalization."""
    a = (jax.random.uniform(key, (n, n)) < 0.1).astype(jnp.float32)
    a = jnp.maximum(a, a.T)
    a = a + jnp.eye(n, dtype=jnp.float32)
    deg = a.sum(axis=1)
    d_inv_sqrt = 1.0 / jnp.sqrt(jnp.maximum(deg, 1e-12))
    return d_inv_sqrt[:, None] * a * d_inv_sqrt[None, :]


if __name__ == "__main__":
    N, IN_CH, HIDDEN, OUT_CH = 64, 16, 32, 8
    NUM_LAYERS, HOPS = 2, 2

    key = jax.random.PRNGKey(0)
    kx, kadj, kparam = jax.random.split(key, 3)

    x = jax.random.normal(kx, (N, IN_CH), jnp.float32)
    adj = gcn_norm_dense(kadj, N)
    params = init_mixhop_params(kparam, IN_CH, HIDDEN, OUT_CH,
                                num_layers=NUM_LAYERS, hops=HOPS)

    out = mixhop_forward(x, adj, params)
    out = jax.block_until_ready(out)

    ref = reference_forward(x, adj, params)
    np.testing.assert_allclose(np.asarray(out), np.asarray(ref),
                               rtol=2e-2, atol=2e-2)
    assert out.shape == (N, OUT_CH)
    print("KERNEL_OK")
</pallas_src>

<mosaic_0001>
module attributes {stable_mosaic.version = 11 : i64} {
  func.func @_mixhop_fused_kernel(%arg0: memref<64x16xbf16, #tpu.memory_space<vmem>>, %arg1: memref<64x64xbf16, #tpu.memory_space<vmem>>, %arg2: memref<16x384xbf16, #tpu.memory_space<vmem>>, %arg3: memref<1x384xf32, #tpu.memory_space<vmem>>, %arg4: memref<1x384xf32, #tpu.memory_space<vmem>>, %arg5: memref<384x384xbf16, #tpu.memory_space<vmem>>, %arg6: memref<1x384xf32, #tpu.memory_space<vmem>>, %arg7: memref<384x128xbf16, #tpu.memory_space<vmem>>, %arg8: memref<1x128xf32, #tpu.memory_space<vmem>>, %arg9: memref<64x128xbf16, #tpu.memory_space<vmem>>, %arg10: memref<64x384xbf16, #tpu.memory_space<vmem>>, %arg11: memref<64x384xbf16, #tpu.memory_space<vmem>>) attributes {dimension_semantics = [], scalar_prefetch = 0 : i64, scratch_operands = 2 : i64, tpu.core_type = #tpu.core_type<tc>} {
    %c0 = arith.constant 0 : index
    %c0_0 = arith.constant 0 : index
    %0 = vector.load %arg1[%c0, %c0_0] : memref<64x64xbf16, #tpu.memory_space<vmem>>, vector<64x64xbf16>
    %c0_1 = arith.constant 0 : index
    %c0_2 = arith.constant 0 : index
    %1 = vector.load %arg0[%c0_1, %c0_2] : memref<64x16xbf16, #tpu.memory_space<vmem>>, vector<64x16xbf16>
    %c0_3 = arith.constant 0 : index
    %c0_4 = arith.constant 0 : index
    %2 = vector.load %arg2[%c0_3, %c0_4] : memref<16x384xbf16, #tpu.memory_space<vmem>>, vector<16x384xbf16>
    %cst = arith.constant dense<0.000000e+00> : vector<64x384xf32>
    %3 = tpu.matmul %1, %2, %cst {dimension_numbers = #tpu.dot_dimension_numbers<[1], [0], [0], [1], [0, 0, 1, 1], [], []>} : vector<64x16xbf16>, vector<16x384xbf16>, vector<64x384xf32> -> vector<64x384xf32>
    %c0_5 = arith.constant 0 : index
    %c0_6 = arith.constant 0 : index
    %4 = vector.load %arg3[%c0_5, %c0_6] : memref<1x384xf32, #tpu.memory_space<vmem>>, vector<1x384xf32>
    %5 = vector.broadcast %4 : vector<1x384xf32> to vector<64x384xf32>
    %6 = arith.addf %3, %5 : vector<64x384xf32>
    %7 = arith.truncf %6 : vector<64x384xf32> to vector<64x384xbf16>
    %c0_7 = arith.constant 0 : index
    %c0_8 = arith.constant 0 : index
    %8 = vector.load %arg10[%c0_7, %c0_8] : memref<64x384xbf16, #tpu.memory_space<vmem>>, vector<64x384xbf16>
    tpu.vector_store %arg10[%c0_7, %c0_8], %7 {strides = array<i32>} : memref<64x384xbf16, #tpu.memory_space<vmem>>, vector<64x384xbf16>,
    %c0_9 = arith.constant 0 : index
    %c0_10 = arith.constant 0 : index
    %9 = vector.load %arg10[%c0_9, %c0_10] : memref<64x384xbf16, #tpu.memory_space<vmem>>, vector<64x256xbf16>
    %cst_11 = arith.constant dense<0.000000e+00> : vector<64x256xf32>
    %10 = tpu.matmul %0, %9, %cst_11 {dimension_numbers = #tpu.dot_dimension_numbers<[1], [0], [0], [1], [0, 0, 1, 1], [], []>} : vector<64x64xbf16>, vector<64x256xbf16>, vector<64x256xf32> -> vector<64x256xf32>
    %11 = arith.truncf %10 : vector<64x256xf32> to vector<64x256xbf16>
    %c0_12 = arith.constant 0 : index
    %c0_13 = arith.constant 0 : index
    %12 = vector.load %arg10[%c0_12, %c0_13] : memref<64x384xbf16, #tpu.memory_space<vmem>>, vector<64x256xbf16>
    tpu.vector_store %arg10[%c0_12, %c0_13], %11 {strides = array<i32>} : memref<64x384xbf16, #tpu.memory_space<vmem>>, vector<64x256xbf16>,
    %c0_14 = arith.constant 0 : index
    %c0_15 = arith.constant 0 : index
    %13 = vector.load %arg10[%c0_14, %c0_15] : memref<64x384xbf16, #tpu.memory_space<vmem>>, vector<64x128xbf16>
    %cst_16 = arith.constant dense<0.000000e+00> : vector<64x128xf32>
    %14 = tpu.matmul %0, %13, %cst_16 {dimension_numbers = #tpu.dot_dimension_numbers<[1], [0], [0], [1], [0, 0, 1, 1], [], []>} : vector<64x64xbf16>, vector<64x128xbf16>, vector<64x128xf32> -> vector<64x128xf32>
    %15 = arith.truncf %14 : vector<64x128xf32> to vector<64x128xbf16>
    %c0_17 = arith.constant 0 : index
    %c0_18 = arith.constant 0 : index
    %16 = vector.load %arg10[%c0_17, %c0_18] : memref<64x384xbf16, #tpu.memory_space<vmem>>, vector<64x128xbf16>
    tpu.vector_store %arg10[%c0_17, %c0_18], %15 {strides = array<i32>} : memref<64x384xbf16, #tpu.memory_space<vmem>>, vector<64x128xbf16>,
    %c0_19 = arith.constant 0 : index
    %c0_20 = arith.constant 0 : index
    %17 = vector.load %arg10[%c0_19, %c0_20] : memref<64x384xbf16, #tpu.memory_space<vmem>>, vector<64x384xbf16>
    %18 = arith.extf %17 : vector<64x384xbf16> to vector<64x384xf32>
    %c0_21 = arith.constant 0 : index
    %c0_22 = arith.constant 0 : index
    %19 = vector.load %arg4[%c0_21, %c0_22] : memref<1x384xf32, #tpu.memory_space<vmem>>, vector<1x384xf32>
    %20 = vector.broadcast %19 : vector<1x384xf32> to vector<64x384xf32>
    %21 = arith.addf %18, %20 : vector<64x384xf32>
    %cst_23 = arith.constant 0.000000e+00 : f32
    %22 = vector.broadcast %cst_23 : f32 to vector<64x384xf32>
    %23 = arith.maximumf %21, %22 : vector<64x384xf32>
    %24 = arith.truncf %23 : vector<64x384xf32> to vector<64x384xbf16>
    %c0_24 = arith.constant 0 : index
    %c0_25 = arith.constant 0 : index
    %25 = vector.load %arg10[%c0_24, %c0_25] : memref<64x384xbf16, #tpu.memory_space<vmem>>, vector<64x384xbf16>
    tpu.vector_store %arg10[%c0_24, %c0_25], %24 {strides = array<i32>} : memref<64x384xbf16, #tpu.memory_space<vmem>>, vector<64x384xbf16>,
    %c0_26 = arith.constant 0 : index
    %c0_27 = arith.constant 0 : index
    %26 = vector.load %arg10[%c0_26, %c0_27] : memref<64x384xbf16, #tpu.memory_space<vmem>>, vector<64x384xbf16>
    %c0_28 = arith.constant 0 : index
    %c0_29 = arith.constant 0 : index
    %27 = vector.load %arg5[%c0_28, %c0_29] : memref<384x384xbf16, #tpu.memory_space<vmem>>, vector<384x384xbf16>
    %cst_30 = arith.constant dense<0.000000e+00> : vector<64x384xf32>
    %28 = tpu.matmul %26, %27, %cst_30 {dimension_numbers = #tpu.dot_dimension_numbers<[1], [0], [0], [1], [0, 0, 1, 1], [], []>} : vector<64x384xbf16>, vector<384x384xbf16>, vector<64x384xf32> -> vector<64x384xf32>
    %c0_31 = arith.constant 0 : index
    %c0_32 = arith.constant 0 : index
    %29 = vector.load %arg6[%c0_31, %c0_32] : memref<1x384xf32, #tpu.memory_space<vmem>>, vector<1x384xf32>
    %30 = vector.broadcast %29 : vector<1x384xf32> to vector<64x384xf32>
    %31 = arith.addf %28, %30 : vector<64x384xf32>
    %32 = arith.truncf %31 : vector<64x384xf32> to vector<64x384xbf16>
    %c0_33 = arith.constant 0 : index
    %c0_34 = arith.constant 0 : index
    %33 = vector.load %arg11[%c0_33, %c0_34] : memref<64x384xbf16, #tpu.memory_space<vmem>>, vector<64x384xbf16>
    tpu.vector_store %arg11[%c0_33, %c0_34], %32 {strides = array<i32>} : memref<64x384xbf16, #tpu.memory_space<vmem>>, vector<64x384xbf16>,
    %c0_35 = arith.constant 0 : index
    %c0_36 = arith.constant 0 : index
    %34 = vector.load %arg11[%c0_35, %c0_36] : memref<64x384xbf16, #tpu.memory_space<vmem>>, vector<64x256xbf16>
    %cst_37 = arith.constant dense<0.000000e+00> : vector<64x256xf32>
    %35 = tpu.matmul %0, %34, %cst_37 {dimension_numbers = #tpu.dot_dimension_numbers<[1], [0], [0], [1], [0, 0, 1, 1], [], []>} : vector<64x64xbf16>, vector<64x256xbf16>, vector<64x256xf32> -> vector<64x256xf32>
    %36 = arith.truncf %35 : vector<64x256xf32> to vector<64x256xbf16>
    %c0_38 = arith.constant 0 : index
    %c0_39 = arith.constant 0 : index
    %37 = vector.load %arg11[%c0_38, %c0_39] : memref<64x384xbf16, #tpu.memory_space<vmem>>, vector<64x256xbf16>
    tpu.vector_store %arg11[%c0_38, %c0_39], %36 {strides = array<i32>} : memref<64x384xbf16, #tpu.memory_space<vmem>>, vector<64x256xbf16>,
    %c0_40 = arith.constant 0 : index
    %c0_41 = arith.constant 0 : index
    %38 = vector.load %arg11[%c0_40, %c0_41] : memref<64x384xbf16, #tpu.memory_space<vmem>>, vector<64x128xbf16>
    %cst_42 = arith.constant dense<0.000000e+00> : vector<64x128xf32>
    %39 = tpu.matmul %0, %38, %cst_42 {dimension_numbers = #tpu.dot_dimension_numbers<[1], [0], [0], [1], [0, 0, 1, 1], [], []>} : vector<64x64xbf16>, vector<64x128xbf16>, vector<64x128xf32> -> vector<64x128xf32>
    %40 = arith.truncf %39 : vector<64x128xf32> to vector<64x128xbf16>
    %c0_43 = arith.constant 0 : index
    %c0_44 = arith.constant 0 : index
    %41 = vector.load %arg11[%c0_43, %c0_44] : memref<64x384xbf16, #tpu.memory_space<vmem>>, vector<64x128xbf16>
    tpu.vector_store %arg11[%c0_43, %c0_44], %40 {strides = array<i32>} : memref<64x384xbf16, #tpu.memory_space<vmem>>, vector<64x128xbf16>,
    %c0_45 = arith.constant 0 : index
    %c0_46 = arith.constant 0 : index
    %42 = vector.load %arg11[%c0_45, %c0_46] : memref<64x384xbf16, #tpu.memory_space<vmem>>, vector<64x384xbf16>
    %c0_47 = arith.constant 0 : index
    %c0_48 = arith.constant 0 : index
    %43 = vector.load %arg7[%c0_47, %c0_48] : memref<384x128xbf16, #tpu.memory_space<vmem>>, vector<384x128xbf16>
    %cst_49 = arith.constant dense<0.000000e+00> : vector<64x128xf32>
    %44 = tpu.matmul %42, %43, %cst_49 {dimension_numbers = #tpu.dot_dimension_numbers<[1], [0], [0], [1], [0, 0, 1, 1], [], []>} : vector<64x384xbf16>, vector<384x128xbf16>, vector<64x128xf32> -> vector<64x128xf32>
    %c0_50 = arith.constant 0 : index
    %c0_51 = arith.constant 0 : index
    %45 = vector.load %arg8[%c0_50, %c0_51] : memref<1x128xf32, #tpu.memory_space<vmem>>, vector<1x128xf32>
    %46 = vector.broadcast %45 : vector<1x128xf32> to vector<64x128xf32>
    %47 = arith.addf %44, %46 : vector<64x128xf32>
    %48 = arith.truncf %47 : vector<64x128xf32> to vector<64x128xbf16>
    %c0_52 = arith.constant 0 : index
    %c0_53 = arith.constant 0 : index
    %49 = vector.load %arg9[%c0_52, %c0_53] : memref<64x128xbf16, #tpu.memory_space<vmem>>, vector<64x128xbf16>
    tpu.vector_store %arg9[%c0_52, %c0_53], %48 {strides = array<i32>} : memref<64x128xbf16, #tpu.memory_space<vmem>>, vector<64x128xbf16>,
    return
  }
}

</mosaic_0001>

<bundles_post_ra>
// kernel: tpu_custom_call.1
= control target key start
LH: loop header
LB: loop body
LE: loop exit
PB: predicated region body
PF: predicated region fallthrough
CT: control target
= control target key end

     0   :  { %14 = vsyncpa [#allocation5], 0  ;;  %s3894_s0 = inlined_call_operand.vmem [shape: bf16[64,16], index: 0, kind: input, shape index: {}]   ;;  %s3895_s1 = inlined_call_operand.vmem [shape: bf16[64,64], index: 1, kind: input, shape index: {}]   ;;  %s3896_s2 = inlined_call_operand.hbm [shape: bf16[16,384], index: 2, kind: input, shape index: {}]   ;;  %s3897_s3 = inlined_call_operand.vmem [shape: f32[1,384], index: 3, kind: input, shape index: {}]   ;;  %s3898_s4 = inlined_call_operand.vmem [shape: f32[1,384], index: 4, kind: input, shape index: {}]   ;;  %s3899_s5 = inlined_call_operand.hbm [shape: bf16[384,384], index: 5, kind: input, shape index: {}]   ;;  %s3900_s6 = inlined_call_operand.vmem [shape: f32[1,384], index: 6, kind: input, shape index: {}]   ;;  %s3901_s7 = inlined_call_operand.hbm [shape: bf16[384,128], index: 7, kind: input, shape index: {}]   ;;  %s3902_s8 = inlined_call_operand.vmem [shape: f32[1,128], index: 8, kind: input, shape index: {}]   ;;  %s3903_s9 = inlined_call_operand.hbm [shape: bf16[64,128], index: 9, kind: output, shape index: {}]  }
   0x1   :  { %15 = vsyncpa [#allocation8], 0 }
   0x2   :  { %16 = vsyncpa [#allocation6], 0  ;;  %s3552_s30 = smov [#allocation7]   ;;  %s3553_s11 = smov [#allocation4]  }
   0x3   :  { %s42_s10 = sshll.u32 %s3552_s30, 4  ;;  %s26_s12 = sshll.u32 %s3553_s11, 4  ;;  %s43_s10 = int_to_ptr.vmem [resolvable:$true] %s42_s10  ;;  %s27_s12 = int_to_ptr.vmem [resolvable:$true] %s26_s12 }
   0x4   :  { %s3474_s13 = scalar_lea.vmem %s43_s10, 9216  ;;  %p3479_p1 = scmp.lt.s32.totalorder %s43_s10, %s43_s10 }
   0x5   :  { %p3475_p0 = scmp.ne.s32.totalorder %s43_s10, %s3474_s13  ;;  %p3480_p2 = scmp.lt.s32.totalorder %s3474_s13, %s3474_s13 }
   0x7   :  { %p3481_p3 = por %p3480_p2, %p3479_p1 }
   0x9   :  { %p3482_p4 = pnand %p3481_p3, %p3475_p0 }
   0xb   :  { %3485 = shalt.err (!%p3482_p4)
}
   0xc   :  { %s3554_s14 = smov 192   ;;  %s3555_s15 = smov 12  }
   0xd   :  { %48 = dma.hbm_to_vmem [thread:$0]  %s3899_s5, 9216, %s43_s10, [#allocation8], %s3554_s14, %s3554_s14, %s3555_s15  }
   0xe   :  { %s3494_s18 = scalar_lea.vmem %s27_s12, 384  ;;  %p3499_p6 = scmp.lt.s32.totalorder %s27_s12, %s27_s12 }
   0xf   :  { %p3495_p5 = scmp.ne.s32.totalorder %s27_s12, %s3494_s18  ;;  %p3500_p7 = scmp.lt.s32.totalorder %s3494_s18, %s3494_s18 }
  0x11   :  { %p3501_p8 = por %p3500_p7, %p3499_p6 }
  0x13   :  { %p3502_p9 = pnand %p3501_p8, %p3495_p5 }
  0x15   :  { %3505 = shalt.err (!%p3502_p9)
}
  0x16   :  { %32 = dma.hbm_to_vmem [thread:$0]  %s3896_s2, 384, %s27_s12, [#allocation5], %s3554_s14, %s3554_s14, %s3555_s15  }
  0x17   :  { %s3556_s21 = smov [#allocation9]  }
  0x18   :  { %s56_s22 = sshll.u32 %s3556_s21, 4  ;;  %s57_s22 = int_to_ptr.vmem [resolvable:$true] %s56_s22 }
  0x19   :  { %s3514_s23 = scalar_lea.vmem %s57_s22, 3072  ;;  %p3519_p11 = scmp.lt.s32.totalorder %s57_s22, %s57_s22 }
  0x1a   :  { %p3515_p10 = scmp.ne.s32.totalorder %s57_s22, %s3514_s23  ;;  %p3520_p12 = scmp.lt.s32.totalorder %s3514_s23, %s3514_s23 }
  0x1c   :  { %p3521_p13 = por %p3520_p12, %p3519_p11 }
  0x1e   :  { %p3522_p0 = pnand %p3521_p13, %p3515_p10 }
  0x20   :  { %3525 = shalt.err (!%p3522_p0)
}
  0x21   :  { %s3557_s5 = smov 64   ;;  %s3558_s24 = smov 4  }
  0x22   :  { %62 = dma.hbm_to_vmem [thread:$0]  %s3901_s7, 3072, %s57_s22, [#allocation8], %s3557_s5, %s3557_s5, %s3558_s24  }
  0x23   :  { %3546 = dma.done.wait [#allocation5], 384  }
  0x24   :  { %3547 = vsyncadd [#allocation5], 4294966912 }
  0x25   :  { %3548 = dma.done.wait [#allocation8], 12288  }
  0x26   :  { %3549 = vsyncadd [#allocation8], 4294955008  ;;  %v3904_v0 = vmov 0   ;;  %v3278_v1 = vld [vmem:[#allocation4 + $0x4] ss:$12 sps:$4 sm:$0xff]   ;;  %vm148_vm0 = vcmask 130048   ;;  %v97_v9 = vlaneseq }
  0x27   :  { %193 = vmatprep.mubr.bf16.mxu0 %v3904_v0  ;;  %223 = vmatprep.mubr.bf16.mxu1 %v3904_v0  ;;  %v3280_v2 = vld [vmem:[#allocation4] ss:$12 sps:$4 sm:$0xff]   ;;  %v3282_v4 = vld [vmem:[%s3894_s0 + $0x18] sm:$0xff]   ;;  %v3284_v6 = vld [vmem:[%s3894_s0 + $0x10] sm:$0xff]   ;;  %vm463_vm1 = vcmask 523264  }
  0x28   :  { %175 = vmatprep.subr.bf16.mxu0 %v3278_v1  ;;  %v3281_v3 = vld [vmem:[%s3894_s0] sm:$0xff]   ;;  %3267 = vmatprep.subr.bf16.mxu1 %v3278_v1  ;;  %v3283_v5 = vld [vmem:[%s3894_s0 + $0x8] sm:$0xff]   ;;  %v3652_v10 = vshrl.u32 %v97_v9, 7  ;;  %v3678_v57 = vld [vmem:[%s3895_s1 + $0x10] sm:$0xff]  }
  0x29   :  { %176 = vmatpush1.bf16.msra.mxu0 %v3280_v2  ;;  %3268 = vmatpush1.bf16.msra.mxu1 %v3280_v2  ;;  %v3285_v7 = vld [vmem:[#allocation4 + $0x8] ss:$12 sps:$4 sm:$0xff]   ;;  %v3286_v8 = vld [vmem:[%s3895_s1] sm:$0xff]   ;;  %v3686_v58 = vld [vmem:[%s3895_s1 + $0x18] sm:$0xff]  }
  0x2a   :  { %3177 = vmatprep.subr.bf16.mxu1 %v3285_v7  ;;  %v3655_v11 = vsub.s32 0, %v3652_v10  ;;  %v3658_v12 = vsub.s32 1, %v3652_v10  ;;  %v95_v13 = vld [vmem:[%s3897_s3] sm:$0x7]  ;;  %v3670_v56 = vld [vmem:[%s3895_s1 + $0x8] sm:$0xff]   ;;  %v3691_v59 = vsub.s32 2, %v3652_v10 }
  0x2b   :  { %v3697_v9 = vld [vmem:[%s3898_s4] sm:$0x7] }
  0x2c   :  { %2680 = vmatmul.mubr.msk.bf16.vlgmr.msra.gmra.mxu0 %vm148_vm0, %v3281_v3  ;;  %2683 = vmatmul.mubr.msk.bf16.vlgmr.msra.gmra.mxu1 %vm148_vm0, %v3282_v4  ;;  %v100_v16 = vrot.slane %v95_v13, %v3655_v11  ;;  %v104_v17 = vrot.slane %v95_v13, %v3658_v12  ;;  %v108_v60 = vrot.slane %v95_v13, %v3691_v59 }
  0x2d   :  { %203 = vmatprep.mubr.bf16.mxu0 %v3904_v0  ;;  %3179 = vmatprep.mubr.msk.bf16.mxu1 %vm148_vm0, %v3281_v3 }
  0x2e   :  { %3178 = vmatpush3.bf16.msra.mxu1 %v3285_v7 }
  0x34   :  { %2681 = vmatmul.mubr.msk.bf16.gmra.mxu0 %vm148_vm0, %v3283_v5  ;;  %3180 = vmatmul.mubr.msk.bf16.vlgmr.msra.gmra.mxu1 %vm148_vm0, %v3283_v5 }
  0x35   :  { %213 = vmatprep.mubr.bf16.mxu0 %v3904_v0  ;;  %3183 = vmatprep.mubr.msk.bf16.mxu1 %vm148_vm0, %v3284_v6 }
  0x3c   :  { %2682 = vmatmul.mubr.msk.bf16.gmra.mxu0 %vm148_vm0, %v3284_v6  ;;  %3184 = vmatmul.mubr.msk.bf16.gmra.mxu1 %vm148_vm0, %v3282_v4 }
  0x3d   :  { %508 = vmatprep.mubr.bf16.mxu1 %v3904_v0  ;;  %3195 = vmatprep.mubr.msk.bf16.mxu0 %vm463_vm1, %v3286_v8 }
  0xec   :  { %v195_v14 = vpop.f32.mrf.mxu0  ;;  %v225_v15 = vpop.f32.mrf.mxu1 }
  0xed   :  { %v226_v20 = vadd.f32 %v225_v15, %v100_v16  ;;  %v196_v51 = vadd.f32 %v195_v14, %v100_v16 }
  0xee   :  { %v197_v18 = vpop.f32.mrf.mxu0  ;;  %v227_v19 = vpop.f32.mrf.mxu1 }
  0xef   :  { %v228_v21 = vadd.f32 %v227_v19, %v104_v17  ;;  %v198_v47 = vadd.f32 %v197_v18, %v104_v17 }
  0xf0   :  { %v199_v22 = vpop.f32.mrf.mxu0  ;;  %v229_v23 = vpop.f32.mrf.mxu1 }
  0xf1   :  { %v230_v24 = vadd.f32 %v229_v23, %v100_v16  ;;  %v200_v48 = vadd.f32 %v199_v22, %v100_v16 }
  0xf2   :  { %v201_v25 = vpop.f32.mrf.mxu0  ;;  %v231_v26 = vpop.f32.mrf.mxu1 }
  0xf3   :  { %v232_v27 = vadd.f32 %v231_v26, %v104_v17  ;;  %v3443_v31 = vpack.c.bf16 %v230_v24, %v226_v20  ;;  %v202_v45 = vadd.f32 %v201_v25, %v104_v17  ;;  %v3449_v55 = vpack.c.bf16 %v200_v48, %v196_v51 }
  0xf4   :  { %v205_v28 = vpop.f32.mrf.mxu0  ;;  %v3181_v61 = vpop.f32.mrf.mxu1 }
  0xf5   :  { %v3442_v30 = vpack.c.bf16 %v232_v27, %v228_v21  ;;  %v206_v46 = vadd.f32 %v205_v28, %v100_v16  ;;  %v3448_v54 = vpack.c.bf16 %v202_v45, %v198_v47  ;;  %v277_v62 = vadd.f32 %v3181_v61, %v108_v60 }
  0xf6   :  { %v207_v29 = vpop.f32.mrf.mxu0  ;;  %v268_v63 = vpop.f32.mrf.mxu1 }
  0xf7   :  { %484 = vmatprep.subr.bf16.mxu1 %v3442_v30  ;;  %v208_v39 = vadd.f32 %v207_v29, %v104_v17  ;;  %v2946_v1 = vpack.c.bf16 %v277_v62, %v277_v62  ;;  %v269_v2 = vadd.f32 %v268_v63, %v108_v60 }
  0xf8   :  { %v209_v32 = vpop.f32.mrf.mxu0  ;;  %485 = vmatpush1.bf16.msra.mxu1 %v3443_v31  ;;  %v3182_v3 = vpop.f32.mrf.mxu1 }
  0xf9   :  { %v210_v41 = vadd.f32 %v209_v32, %v100_v16  ;;  %384 = vst [vmem:[#allocation2 + $0x20] sm:$0xf] %v2946_v1  ;;  %v2942_v4 = vpack.c.bf16 %v269_v2, %v269_v2  ;;  %v280_v5 = vadd.f32 %v3182_v3, %v108_v60 }
  0xfa   :  { %v211_v33 = vpop.f32.mrf.mxu0  ;;  %v271_v6 = vpop.f32.mrf.mxu1 }
  0xfb   :  { %v212_v37 = vadd.f32 %v211_v33, %v104_v17  ;;  %v3447_v53 = vpack.c.bf16 %v210_v41, %v206_v46  ;;  %380 = vst [vmem:[#allocation2 + $0x8] sm:$0xf] %v2942_v4  ;;  %v2948_v7 = vpack.c.bf16 %v280_v5, %v280_v5 }
  0xfc   :  { %v215_v34 = vpop.f32.mrf.mxu0  ;;  %v3185_v10 = vpop.f32.mrf.mxu1 }
  0xfd   :  { %v216_v42 = vadd.f32 %v215_v34, %v100_v16  ;;  %v3446_v52 = vpack.c.bf16 %v212_v37, %v208_v39  ;;  %386 = vst [vmem:[#allocation2 + $0x2c] sm:$0xf] %v2948_v7  ;;  %v293_v14 = vadd.f32 %v3185_v10, %v108_v60  ;;  %v3322_v7 = vld [vmem:[#allocation7 + $0xa8] ss:$12 sps:$4 sm:$0xff]  }
  0xfe   :  { %v217_v35 = vpop.f32.mrf.mxu0  ;;  %v284_v15 = vpop.f32.mrf.mxu1  ;;  %v3327_v10 = vld [vmem:[#allocation7 + $0x94] ss:$12 sps:$4 sm:$0xff]  }
  0xff   :  { %v218_v38 = vadd.f32 %v217_v35, %v104_v17  ;;  %v285_v18 = vadd.f32 %v284_v15, %v108_v60  ;;  %v3328_v15 = vld [vmem:[#allocation7 + $0x78] ss:$12 sps:$4 sm:$0xff]  }
 0x100   :  { %v219_v36 = vpop.f32.mrf.mxu0  ;;  %v747_v19 = vld [vmem:[#allocation2 + $0x20] sm:$0xf]  ;;  %v3186_v20 = vpop.f32.mrf.mxu1 }
 0x101   :  { %v220_v43 = vadd.f32 %v219_v36, %v100_v16  ;;  %v795_v16 = vrot.slane %v3697_v9, %v3691_v59  ;;  %v766_v21 = vunpack.c.l.bf16 %v747_v19  ;;  %v2950_v22 = vpack.c.bf16 %v285_v18, %v285_v18  ;;  %v3336_v18 = vld [vmem:[#allocation7 + $0x4c] ss:$12 sps:$4 sm:$0xff]  }
 0x102   :  { %v221_v40 = vpop.f32.mrf.mxu0  ;;  %v296_v23 = vadd.f32 %v3186_v20, %v108_v60  ;;  %v743_v24 = vld [vmem:[#allocation2 + $0x8] sm:$0xf]  ;;  %v287_v25 = vpop.f32.mrf.mxu1  ;;  %v3334_v20 = vld [vmem:[#allocation7 + $0x48] ss:$12 sps:$4 sm:$0xff]  }
 0x103   :  { %v222_v44 = vadd.f32 %v221_v40, %v104_v17  ;;  %v3445_v50 = vpack.c.bf16 %v220_v43, %v216_v42  ;;  %v2954_v17 = vpack.c.bf16 %v293_v14, %v293_v14  ;;  %v807_v26 = vadd.f32 %v795_v16, %v766_v21  ;;  %388 = vst [vmem:[#allocation2 + $0x38] sm:$0xf] %v2950_v22  ;;  %v3330_v14 = vld [vmem:[#allocation7 + $0x7c] ss:$12 sps:$4 sm:$0xff]   ;;  %v3339_v22 = vld [vmem:[#allocation7 + $0x34] ss:$12 sps:$4 sm:$0xff]  }
 0x104   :  { %v760_v27 = vunpack.c.l.bf16 %v743_v24  ;;  %v2956_v28 = vpack.c.bf16 %v296_v23, %v296_v23  ;;  %v288_v29 = vadd.f32 %v287_v25, %v108_v60  ;;  %v749_v30 = vld [vmem:[#allocation2 + $0x2c] sm:$0xf]  ;;  %v3337_v25 = vld [vmem:[#allocation7 + $0x30] ss:$12 sps:$4 sm:$0xff]  }
 0x105   :  { %v3444_v49 = vpack.c.bf16 %v222_v44, %v218_v38  ;;  %392 = vst [vmem:[#allocation2 + $0x50] sm:$0xf] %v2954_v17  ;;  %v831_v31 = vmax.f32 %v807_v26, 0.0  ;;  %v769_v33 = vunpack.c.l.bf16 %v749_v30  ;;  %v3333_v17 = vld [vmem:[#allocation7 + $0x64] ss:$12 sps:$4 sm:$0xff]  }
 0x106   :  { %v801_v32 = vadd.f32 %v795_v16, %v760_v27  ;;  %394 = vst [vmem:[#allocation2 + $0x5c] sm:$0xf] %v2956_v28  ;;  %v2952_v34 = vpack.c.bf16 %v288_v29, %v288_v29  ;;  %v3342_v27 = vld [vmem:[#allocation7 + $0x1c] ss:$12 sps:$4 sm:$0xff]   ;;  %v3340_v30 = vld [vmem:[#allocation7 + $0x18] ss:$12 sps:$4 sm:$0xff]  }
 0x107   :  { %486 = vmatprep.subr.bf16.mxu1 %v3444_v49  ;;  %v2978_v36 = vpack.c.bf16 %v831_v31, %v831_v31  ;;  %v810_v38 = vadd.f32 %v795_v16, %v769_v33 }
 0x108   :  { %487 = vmatpush1.bf16.msra.mxu1 %v3445_v50  ;;  %v825_v37 = vmax.f32 %v801_v32, 0.0  ;;  %390 = vst [vmem:[#allocation2 + $0x44] sm:$0xf] %v2952_v34 }
 0x109   :  { %488 = vmatprep.subr.bf16.mxu1 %v3446_v52  ;;  %932 = vst [vmem:[#allocation2 + $0x20] sm:$0xf] %v2978_v36  ;;  %v834_v42 = vmax.f32 %v810_v38, 0.0 }
 0x10a   :  { %v2974_v41 = vpack.c.bf16 %v825_v37, %v825_v37  ;;  %v751_v45 = vld [vmem:[#allocation2 + $0x38] sm:$0xf] }
 0x10b   :  { %v2980_v46 = vpack.c.bf16 %v834_v42, %v834_v42  ;;  %v772_v49 = vunpack.c.l.bf16 %v751_v45 }
 0x10c   :  { %489 = vmatpush1.bf16.msra.mxu1 %v3447_v53  ;;  %v755_v40 = vld [vmem:[#allocation2 + $0x50] sm:$0xf]  ;;  %928 = vst [vmem:[#allocation2 + $0x8] sm:$0xf] %v2974_v41 }
 0x10d   :  { %490 = vmatprep.subr.bf16.mxu1 %v3448_v54  ;;  %v778_v44 = vunpack.c.l.bf16 %v755_v40  ;;  %v757_v50 = vld [vmem:[#allocation2 + $0x5c] sm:$0xf]  ;;  %934 = vst [vmem:[#allocation2 + $0x2c] sm:$0xf] %v2980_v46  ;;  %v813_v53 = vadd.f32 %v795_v16, %v772_v49 }
 0x10e   :  { %v781_v54 = vunpack.c.l.bf16 %v757_v50 }
 0x10f   :  { %v819_v48 = vadd.f32 %v795_v16, %v778_v44  ;;  %v837_v61 = vmax.f32 %v813_v53, 0.0  ;;  %v3294_v53 = vld [vmem:[#allocation7 + $0x228] ss:$12 sps:$4 sm:$0xff]  }
 0x110   :  { %491 = vmatpush1.bf16.msra.mxu1 %v3449_v55  ;;  %v753_v55 = vld [vmem:[#allocation2 + $0x44] sm:$0xf]  ;;  %v822_v62 = vadd.f32 %v795_v16, %v781_v54  ;;  %v3299_v54 = vld [vmem:[#allocation7 + $0x214] ss:$12 sps:$4 sm:$0xff]  }
 0x111   :  { %v843_v52 = vmax.f32 %v819_v48, 0.0  ;;  %v775_v63 = vunpack.c.l.bf16 %v753_v55  ;;  %v2982_v1 = vpack.c.bf16 %v837_v61, %v837_v61  ;;  %v3297_v55 = vld [vmem:[#allocation7 + $0x210] ss:$12 sps:$4 sm:$0xff]   ;;  %v3300_v61 = vld [vmem:[#allocation7 + $0x1f8] ss:$12 sps:$4 sm:$0xff]  }
 0x112   :  { %v846_v2 = vmax.f32 %v822_v62, 0.0  ;;  %v3305_v62 = vld [vmem:[#allocation7 + $0x1e4] ss:$12 sps:$4 sm:$0xff]  }
 0x113   :  { %2716 = vmatmul.mubr.msk.bf16.vlgmr.msra.gmra.mxu1 %vm463_vm1, %v3286_v8  ;;  %v272_v8 = vadd.f32 %v271_v6, %v108_v60  ;;  %v2986_v60 = vpack.c.bf16 %v843_v52, %v843_v52  ;;  %v816_v3 = vadd.f32 %v795_v16, %v775_v63  ;;  %936 = vst [vmem:[#allocation2 + $0x38] sm:$0xf] %v2982_v1  ;;  %v3296_v52 = vld [vmem:[#allocation7 + $0x22c] ss:$12 sps:$4 sm:$0xff]   ;;  %v3306_v1 = vld [vmem:[#allocation7 + $0x1c8] ss:$12 sps:$4 sm:$0xff]  }
 0x114   :  { %518 = vmatprep.mubr.bf16.mxu1 %v3904_v0  ;;  %v2988_v4 = vpack.c.bf16 %v846_v2, %v846_v2  ;;  %v3303_v63 = vld [vmem:[#allocation7 + $0x1e0] ss:$12 sps:$4 sm:$0xff]  }
 0x115   :  { %v2944_v13 = vpack.c.bf16 %v272_v8, %v272_v8  ;;  %940 = vst [vmem:[#allocation2 + $0x50] sm:$0xf] %v2986_v60  ;;  %v840_v5 = vmax.f32 %v816_v3, 0.0  ;;  %v3324_v8 = vld [vmem:[#allocation7 + $0xac] ss:$12 sps:$4 sm:$0xff]  }
 0x116   :  { %942 = vst [vmem:[#allocation2 + $0x5c] sm:$0xf] %v2988_v4  ;;  %1520 = vmatprep.subr.bf16.mxu1 %v3324_v8  ;;  %v3302_v60 = vld [vmem:[#allocation7 + $0x1fc] ss:$12 sps:$4 sm:$0xff]   ;;  %v3311_v2 = vld [vmem:[#allocation7 + $0x1b4] ss:$12 sps:$4 sm:$0xff]  }
 0x117   :  { %382 = vst [vmem:[#allocation2 + $0x14] sm:$0xf] %v2944_v13  ;;  %v2984_v6 = vpack.c.bf16 %v840_v5, %v840_v5  ;;  %1521 = vmatpush1.bf16.msra.mxu1 %v3322_v7  ;;  %v3325_v13 = vld [vmem:[#allocation7 + $0x90] ss:$12 sps:$4 sm:$0xff]   ;;  %v3312_v4 = vld [vmem:[#allocation7 + $0x198] ss:$12 sps:$4 sm:$0xff]  }
 0x118   :  { %1522 = vmatprep.subr.bf16.mxu1 %v3327_v10  ;;  %v3314_v3 = vld [vmem:[#allocation7 + $0x19c] ss:$12 sps:$4 sm:$0xff]   ;;  %v3317_v5 = vld [vmem:[#allocation7 + $0x184] ss:$12 sps:$4 sm:$0xff]  }
 0x119   :  { %938 = vst [vmem:[#allocation2 + $0x44] sm:$0xf] %v2984_v6  ;;  %v3712_v7 = vld [vmem:[#allocation2 + $0x20] ss:$12 sps:$4 sm:$0xff]  }
 0x11b   :  { %2717 = vmatmul.mubr.msk.bf16.gmra.mxu1 %vm463_vm1, %v3670_v56 }
 0x11c   :  { %528 = vmatprep.mubr.bf16.mxu1 %v3904_v0  ;;  %1523 = vmatpush1.bf16.msra.mxu1 %v3325_v13  ;;  %v3345_v13 = vld [vmem:[#allocation7 + $0x4] ss:$12 sps:$4 sm:$0xff]  }
 0x11d   :  { %1524 = vmatprep.subr.bf16.mxu1 %v3330_v14  ;;  %v3720_v10 = vld [vmem:[#allocation2 + $0x50] ss:$12 sps:$4 sm:$0xff]   ;;  %v3343_v14 = vld [vmem:[#allocation7] ss:$12 sps:$4 sm:$0xff]  }
 0x11e   :  { %v745_v35 = vld [vmem:[#allocation2 + $0x14] sm:$0xf] }
 0x11f   :  { %v763_v39 = vunpack.c.l.bf16 %v745_v35 }
 0x120   :  { %1525 = vmatpush1.bf16.msra.mxu1 %v3328_v15  ;;  %v3716_v8 = vld [vmem:[#allocation2 + $0x38] ss:$12 sps:$4 sm:$0xff]  }
 0x121   :  { %v804_v43 = vadd.f32 %v795_v16, %v763_v39  ;;  %v3331_v16 = vld [vmem:[#allocation7 + $0x60] ss:$12 sps:$4 sm:$0xff]   ;;  %1526 = vmatprep.subr.bf16.mxu1 %v3333_v17  ;;  %v3349_v17 = vld [vmem:[#allocation7 + $0x170] ss:$12 sps:$4 sm:$0xff]  }
 0x122   :  { %v3348_v15 = vld [vmem:[#allocation7 + $0x16c] ss:$12 sps:$4 sm:$0xff]  }
 0x123   :  { %2718 = vmatmul.mubr.msk.bf16.gmra.mxu1 %vm463_vm1, %v3678_v57  ;;  %v828_v47 = vmax.f32 %v804_v43, 0.0 }
 0x124   :  { %538 = vmatprep.mubr.bf16.mxu1 %v3904_v0  ;;  %1527 = vmatpush1.bf16.msra.mxu1 %v3331_v16  ;;  %v3346_v16 = vld [vmem:[#allocation7 + $0x168] ss:$12 sps:$4 sm:$0xff]  }
 0x125   :  { %v2976_v51 = vpack.c.bf16 %v828_v47, %v828_v47  ;;  %1528 = vmatprep.subr.bf16.mxu1 %v3336_v18  ;;  %v3350_v18 = vld [vmem:[#allocation7 + $0xb0] ss:$12 sps:$4 sm:$0xff]  }
 0x127   :  { %930 = vst [vmem:[#allocation2 + $0x14] sm:$0xf] %v2976_v51 }
 0x128   :  { %1529 = vmatpush1.bf16.msra.mxu1 %v3334_v20  ;;  %v3354_v20 = vld [vmem:[#allocation7 + $0x158] ss:$12 sps:$4 sm:$0xff]  }
 0x129   :  { %1530 = vmatprep.subr.bf16.mxu1 %v3339_v22  ;;  %v3355_v22 = vld [vmem:[#allocation7 + $0x98] ss:$12 sps:$4 sm:$0xff]  }
 0x12b   :  { %2719 = vmatmul.mubr.msk.bf16.gmra.mxu1 %vm463_vm1, %v3686_v58 }
 0x12c   :  { %1531 = vmatpush1.bf16.msra.mxu1 %v3337_v25  ;;  %v3356_v25 = vld [vmem:[#allocation7 + $0x138] ss:$12 sps:$4 sm:$0xff]  }
 0x12d   :  { %1532 = vmatprep.subr.bf16.mxu1 %v3342_v27  ;;  %v3363_v27 = vld [vmem:[#allocation7 + $0x124] ss:$12 sps:$4 sm:$0xff]  }
 0x12e   :  { %v3708_v6 = vld [vmem:[#allocation2 + $0x8] ss:$12 sps:$4 sm:$0xff]  }
 0x130   :  { %1533 = vmatpush1.bf16.msra.mxu1 %v3340_v30  ;;  %v3365_v30 = vld [vmem:[#allocation7 + $0x68] ss:$12 sps:$4 sm:$0xff]  }
 0x131   :  { %1534 = vmatprep.subr.bf16.mxu1 %v3345_v13 }
 0x134   :  { %1535 = vmatpush1.bf16.msra.mxu1 %v3343_v14 }
 0x135   :  { %1536 = vmatprep.subr.bf16.mxu1 %v3348_v15 }
 0x138   :  { %1537 = vmatpush2.bf16.msra.mxu1 %v3346_v16 }
 0x1d3   :  { %v510_v19 = vpop.f32.mrf.mxu1 }
 0x1d5   :  { %v512_v21 = vpop.f32.mrf.mxu1 }
 0x1d6   :  { %v2957_v23 = vpack.c.bf16 %v512_v21, %v510_v19  ;;  %v3353_v19 = vld [vmem:[#allocation7 + $0x154] ss:$12 sps:$4 sm:$0xff]   ;;  %v3351_v21 = vld [vmem:[#allocation7 + $0x150] ss:$12 sps:$4 sm:$0xff]  }
 0x1d7   :  { %v514_v24 = vpop.f32.mrf.mxu1  ;;  %1538 = vmatprep.subr.bf16.mxu1 %v3353_v19 }
 0x1d8   :  { %597 = vst [vmem:[#allocation2] sm:$0xff] %v2957_v23  ;;  %1539 = vmatpush2.bf16.msra.mxu1 %v3351_v21  ;;  %v3358_v23 = vld [vmem:[#allocation7 + $0x13c] ss:$12 sps:$4 sm:$0xff]  }
 0x1d9   :  { %v516_v26 = vpop.f32.mrf.mxu1  ;;  %1540 = vmatprep.subr.bf16.mxu1 %v3358_v23 }
 0x1da   :  { %v2958_v28 = vpack.c.bf16 %v516_v26, %v514_v24  ;;  %v3359_v24 = vld [vmem:[#allocation7 + $0x140] ss:$12 sps:$4 sm:$0xff]  }
 0x1db   :  { %v520_v29 = vpop.f32.mrf.mxu1  ;;  %v3360_v26 = vld [vmem:[#allocation7 + $0x80] ss:$12 sps:$4 sm:$0xff]  }
 0x1dc   :  { %598 = vst [vmem:[#allocation2 + $0xc] sm:$0xff] %v2958_v28  ;;  %1541 = vmatpush2.bf16.msra.mxu1 %v3356_v25  ;;  %v3364_v28 = vld [vmem:[#allocation7 + $0x128] ss:$12 sps:$4 sm:$0xff]  }
 0x1dd   :  { %v522_v31 = vpop.f32.mrf.mxu1  ;;  %1542 = vmatprep.subr.bf16.mxu1 %v3363_v27 }
 0x1de   :  { %v2959_v32 = vpack.c.bf16 %v522_v31, %v520_v29  ;;  %v3361_v29 = vld [vmem:[#allocation7 + $0x120] ss:$12 sps:$4 sm:$0xff]  }
 0x1df   :  { %v524_v33 = vpop.f32.mrf.mxu1  ;;  %v3368_v31 = vld [vmem:[#allocation7 + $0x10c] ss:$12 sps:$4 sm:$0xff]  }
 0x1e0   :  { %599 = vst [vmem:[#allocation2 + $0x18] sm:$0xff] %v2959_v32  ;;  %1543 = vmatpush2.bf16.msra.mxu1 %v3361_v29  ;;  %v3369_v32 = vld [vmem:[#allocation7 + $0x110] ss:$12 sps:$4 sm:$0xff]  }
 0x1e1   :  { %v526_v34 = vpop.f32.mrf.mxu1  ;;  %1544 = vmatprep.subr.bf16.mxu1 %v3368_v31 }
 0x1e2   :  { %v2960_v35 = vpack.c.bf16 %v526_v34, %v524_v33  ;;  %v3366_v33 = vld [vmem:[#allocation7 + $0x108] ss:$12 sps:$4 sm:$0xff]   ;;  %v3370_v34 = vld [vmem:[#allocation7 + $0x50] ss:$12 sps:$4 sm:$0xff]  }
 0x1e3   :  { %v530_v36 = vpop.f32.mrf.mxu1  ;;  %v3293_v51 = vld [vmem:[#allocation2] ss:$12 sps:$4 sm:$0xff]  }
 0x1e4   :  { %600 = vst [vmem:[#allocation2 + $0x24] sm:$0xff] %v2960_v35  ;;  %1545 = vmatpush2.bf16.msra.mxu1 %v3366_v33  ;;  %v3373_v35 = vld [vmem:[#allocation7 + $0xf4] ss:$12 sps:$4 sm:$0xff]  }
 0x1e5   :  { %v532_v37 = vpop.f32.mrf.mxu1  ;;  %1546 = vmatprep.subr.bf16.mxu1 %v3373_v35 }
 0x1e6   :  { %v2961_v38 = vpack.c.bf16 %v532_v37, %v530_v36  ;;  %v3374_v36 = vld [vmem:[#allocation7 + $0xf8] ss:$12 sps:$4 sm:$0xff]   ;;  %v3371_v37 = vld [vmem:[#allocation7 + $0xf0] ss:$12 sps:$4 sm:$0xff]  }
 0x1e7   :  { %v534_v39 = vpop.f32.mrf.mxu1 }
 0x1e8   :  { %601 = vst [vmem:[#allocation2 + $0x30] sm:$0xff] %v2961_v38  ;;  %v3375_v38 = vld [vmem:[#allocation7 + $0x38] ss:$12 sps:$4 sm:$0xff]   ;;  %1547 = vmatpush2.bf16.msra.mxu1 %v3371_v37 }
 0x1e9   :  { %v536_v40 = vpop.f32.mrf.mxu1 }
 0x1ea   :  { %v2962_v41 = vpack.c.bf16 %v536_v40, %v534_v39  ;;  %v3378_v39 = vld [vmem:[#allocation7 + $0xdc] ss:$12 sps:$4 sm:$0xff]   ;;  %v3379_v40 = vld [vmem:[#allocation7 + $0xe0] ss:$12 sps:$4 sm:$0xff]  }
 0x1eb   :  { %v540_v42 = vpop.f32.mrf.mxu1  ;;  %v3292_v50 = vld [vmem:[#allocation2 + $0x18] ss:$12 sps:$4 sm:$0xff]   ;;  %1548 = vmatprep.subr.bf16.mxu1 %v3378_v39 }
 0x1ec   :  { %602 = vst [vmem:[#allocation2 + $0x3c] sm:$0xff] %v2962_v41  ;;  %v3376_v41 = vld [vmem:[#allocation7 + $0xd8] ss:$12 sps:$4 sm:$0xff]  }
 0x1ed   :  { %v542_v43 = vpop.f32.mrf.mxu1  ;;  %1549 = vmatpush2.bf16.msra.mxu1 %v3376_v41 }
 0x1ee   :  { %v2963_v44 = vpack.c.bf16 %v542_v43, %v540_v42  ;;  %v3380_v42 = vld [vmem:[#allocation7 + $0x20] ss:$12 sps:$4 sm:$0xff]   ;;  %v3383_v43 = vld [vmem:[#allocation7 + $0xc4] ss:$12 sps:$4 sm:$0xff]  }
 0x1ef   :  { %v544_v45 = vpop.f32.mrf.mxu1  ;;  %1550 = vmatprep.subr.bf16.mxu1 %v3383_v43 }
 0x1f0   :  { %603 = vst [vmem:[#allocation2 + $0x48] sm:$0xff] %v2963_v44  ;;  %v3384_v44 = vld [vmem:[#allocation7 + $0xc8] ss:$12 sps:$4 sm:$0xff]  }
 0x1f1   :  { %v546_v46 = vpop.f32.mrf.mxu1 }
 0x1f2   :  { %v2964_v47 = vpack.c.bf16 %v546_v46, %v544_v45  ;;  %v3381_v45 = vld [vmem:[#allocation7 + $0xc0] ss:$12 sps:$4 sm:$0xff]   ;;  %v3385_v46 = vld [vmem:[#allocation7 + $0x8] ss:$12 sps:$4 sm:$0xff]  }
 0x1f3   :  { %v3291_v49 = vld [vmem:[#allocation2 + $0x30] ss:$12 sps:$4 sm:$0xff]   ;;  %1551 = vmatpush2.bf16.msra.mxu1 %v3381_v45 }
 0x1f4   :  { %604 = vst [vmem:[#allocation2 + $0x54] sm:$0xff] %v2964_v47  ;;  %v3723_v47 = vld [vmem:[#allocation7 + $0x230] ss:$12 sps:$4 sm:$0xff]  }
 0x1f5   :  { %3203 = vmatprep.subr.bf16.mxu1 %v3723_v47 }
 0x1fb   :  { %v3290_v48 = vld [vmem:[#allocation2 + $0x48] ss:$12 sps:$4 sm:$0xff]  }
 0x1fc   :  { %3187 = vmatprep.subr.bf16.mxu0 %v3290_v48 }
 0x1fd   :  { %3188 = vmatpush3.bf16.msra.mxu0 %v3290_v48 }
 0x1fe   :  { %3189 = vmatprep.subr.bf16.mxu0 %v3291_v49 }
 0x201   :  { %3190 = vmatpush3.bf16.msra.mxu0 %v3291_v49 }
 0x202   :  { %3191 = vmatprep.subr.bf16.mxu0 %v3292_v50 }
 0x205   :  { %3192 = vmatpush3.bf16.msra.mxu0 %v3292_v50 }
 0x206   :  { %3193 = vmatprep.subr.bf16.mxu0 %v3293_v51 }
 0x209   :  { %3194 = vmatpush3.bf16.msra.mxu0 %v3293_v51 }
 0x20a   :  { %1593 = vmatprep.subr.bf16.mxu0 %v3296_v52 }
 0x20c   :  { %3196 = vmatmul.mubr.msk.bf16.vlgmr.msra.gmra.mxu0 %vm463_vm1, %v3670_v56  ;;  %v3308_v56 = vld [vmem:[#allocation7 + $0x1cc] ss:$12 sps:$4 sm:$0xff]  }
 0x20d   :  { %1594 = vmatpush1.bf16.msra.mxu0 %v3294_v53  ;;  %3199 = vmatprep.mubr.msk.bf16.mxu0 %vm463_vm1, %v3678_v57  ;;  %v3309_v57 = vld [vmem:[#allocation7 + $0x1b0] ss:$12 sps:$4 sm:$0xff]  }
 0x20e   :  { %1595 = vmatprep.subr.bf16.mxu0 %v3299_v54 }
 0x211   :  { %1596 = vmatpush1.bf16.msra.mxu0 %v3297_v55 }
 0x212   :  { %1597 = vmatprep.subr.bf16.mxu0 %v3302_v60 }
 0x214   :  { %3200 = vmatmul.mubr.msk.bf16.gmra.mxu0 %vm463_vm1, %v3686_v58  ;;  %v3315_v58 = vld [vmem:[#allocation7 + $0x180] ss:$12 sps:$4 sm:$0xff]  }
 0x215   :  { %1598 = vmatpush1.bf16.msra.mxu0 %v3300_v61  ;;  %1625 = vmatprep.mubr.bf16.mxu0 %v3904_v0  ;;  %v3728_v61 = vrot.slane %v3697_v9, %v3655_v11 }
 0x216   :  { %1599 = vmatprep.subr.bf16.mxu0 %v3305_v62  ;;  %v3732_v62 = vrot.slane %v3697_v9, %v3658_v12 }
 0x219   :  { %1600 = vmatpush1.bf16.msra.mxu0 %v3303_v63 }
 0x21a   :  { %1601 = vmatprep.subr.bf16.mxu0 %v3308_v56 }
 0x21d   :  { %1602 = vmatpush1.bf16.msra.mxu0 %v3306_v1 }
 0x21e   :  { %1603 = vmatprep.subr.bf16.mxu0 %v3311_v2 }
 0x221   :  { %1604 = vmatpush1.bf16.msra.mxu0 %v3309_v57 }
 0x222   :  { %1605 = vmatprep.subr.bf16.mxu0 %v3314_v3 }
 0x225   :  { %1606 = vmatpush1.bf16.msra.mxu0 %v3312_v4 }
 0x226   :  { %1607 = vmatprep.subr.bf16.mxu0 %v3317_v5 }
 0x229   :  { %1608 = vmatpush1.bf16.msra.mxu0 %v3315_v58 }
 0x22a   :  { %3065 = vmatprep.subr.bf16.mxu0 %v3349_v17 }
 0x22c   :  { %1626 = vmatmul.mubr.bf16.vlgmr.msra.gmra.mxu0 %v3708_v6 }
 0x22d   :  { %1635 = vmatprep.mubr.bf16.mxu0 %v3904_v0  ;;  %3066 = vmatpush3.bf16.msra.mxu0 %v3350_v18 }
 0x22e   :  { %3067 = vmatprep.subr.bf16.mxu0 %v3354_v20 }
 0x231   :  { %3068 = vmatpush3.bf16.msra.mxu0 %v3355_v22 }
 0x232   :  { %3069 = vmatprep.subr.bf16.mxu0 %v3359_v24 }
 0x234   :  { %1636 = vmatmul.mubr.bf16.gmra.mxu0 %v3712_v7 }
 0x235   :  { %1645 = vmatprep.mubr.bf16.mxu0 %v3904_v0  ;;  %3070 = vmatpush3.bf16.msra.mxu0 %v3360_v26 }
 0x236   :  { %3071 = vmatprep.subr.bf16.mxu0 %v3364_v28 }
 0x239   :  { %3072 = vmatpush3.bf16.msra.mxu0 %v3365_v30 }
 0x23a   :  { %3073 = vmatprep.subr.bf16.mxu0 %v3369_v32 }
 0x23c   :  { %1646 = vmatmul.mubr.bf16.gmra.mxu0 %v3716_v8 }
 0x23d   :  { %1655 = vmatprep.mubr.bf16.mxu0 %v3904_v0  ;;  %3074 = vmatpush3.bf16.msra.mxu0 %v3370_v34 }
 0x23e   :  { %3075 = vmatprep.subr.bf16.mxu0 %v3374_v36 }
 0x241   :  { %3076 = vmatpush3.bf16.msra.mxu0 %v3375_v38 }
 0x242   :  { %3077 = vmatprep.subr.bf16.mxu0 %v3379_v40 }
 0x244   :  { %1656 = vmatmul.mubr.bf16.gmra.mxu0 %v3720_v10 }
 0x245   :  { %3078 = vmatpush3.bf16.msra.mxu0 %v3380_v42 }
 0x246   :  { %3079 = vmatprep.subr.bf16.mxu0 %v3384_v44 }
 0x249   :  { %3080 = vmatpush3.bf16.msra.mxu0 %v3385_v46 }
 0x2cc   :  { %v3197_v48 = vpop.f32.mrf.mxu0 }
 0x2cd   :  { %v2967_v49 = vpack.c.bf16 %v3197_v48, %v3197_v48 }
 0x2ce   :  { %v671_v50 = vpop.f32.mrf.mxu0 }
 0x2cf   :  { %736 = vst [vmem:[#allocation2 + $0x18] sm:$0xf] %v2967_v49  ;;  %v2965_v51 = vpack.c.bf16 %v671_v50, %v671_v50 }
 0x2d0   :  { %v3198_v52 = vpop.f32.mrf.mxu0 }
 0x2d1   :  { %734 = vst [vmem:[#allocation2] sm:$0xf] %v2965_v51  ;;  %v2968_v53 = vpack.c.bf16 %v3198_v52, %v3198_v52 }
 0x2d2   :  { %v674_v54 = vpop.f32.mrf.mxu0 }
 0x2d3   :  { %737 = vst [vmem:[#allocation2 + $0x24] sm:$0xf] %v2968_v53  ;;  %v2966_v55 = vpack.c.bf16 %v674_v54, %v674_v54 }
 0x2d4   :  { %v3201_v60 = vpop.f32.mrf.mxu0 }
 0x2d5   :  { %735 = vst [vmem:[#allocation2 + $0xc] sm:$0xf] %v2966_v55  ;;  %v2971_v63 = vpack.c.bf16 %v3201_v60, %v3201_v60 }
 0x2d6   :  { %v746_v56 = vld [vmem:[#allocation2 + $0x18] sm:$0xff]  ;;  %v687_v1 = vpop.f32.mrf.mxu0 }
 0x2d7   :  { %v764_v2 = vunpack.c.l.bf16 %v746_v56  ;;  %v765_v57 = vunpack.c.h.bf16 %v746_v56  ;;  %740 = vst [vmem:[#allocation2 + $0x48] sm:$0xf] %v2971_v63  ;;  %v2969_v3 = vpack.c.bf16 %v687_v1, %v687_v1 }
 0x2d8   :  { %v742_v4 = vld [vmem:[#allocation2] sm:$0xff]  ;;  %v3202_v5 = vpop.f32.mrf.mxu0 }
 0x2d9   :  { %v3735_v58 = vadd.f32 %v3728_v61, %v764_v2  ;;  %v3738_v13 = vadd.f32 %v3732_v62, %v765_v57  ;;  %v758_v14 = vunpack.c.l.bf16 %v742_v4  ;;  %v759_v15 = vunpack.c.h.bf16 %v742_v4  ;;  %738 = vst [vmem:[#allocation2 + $0x30] sm:$0xf] %v2969_v3 }
 0x2da   :  { %v748_v9 = vld [vmem:[#allocation2 + $0x24] sm:$0xff]  ;;  %v2972_v17 = vpack.c.bf16 %v3202_v5, %v3202_v5  ;;  %v690_v16 = vpop.f32.mrf.mxu0 }
 0x2db   :  { %v829_v18 = vmax.f32 %v3735_v58, 0.0  ;;  %v830_v19 = vmax.f32 %v3738_v13, 0.0  ;;  %v799_v20 = vadd.f32 %v3728_v61, %v758_v14  ;;  %v800_v21 = vadd.f32 %v3732_v62, %v759_v15  ;;  %v3392_v58 = vld [vmem:[#allocation7 + $0x1a0] ss:$12 sps:$4 sm:$0xff]  }
 0x2dc   :  { %v767_v22 = vunpack.c.l.bf16 %v748_v9  ;;  %v768_v23 = vunpack.c.h.bf16 %v748_v9  ;;  %v744_v24 = vld [vmem:[#allocation2 + $0xc] sm:$0xff]  ;;  %741 = vst [vmem:[#allocation2 + $0x54] sm:$0xf] %v2972_v17  ;;  %v2970_v25 = vpack.c.bf16 %v690_v16, %v690_v16 }
 0x2dd   :  { %v2977_v26 = vpack.c.bf16 %v830_v19, %v829_v18  ;;  %v823_v27 = vmax.f32 %v799_v20, 0.0  ;;  %v824_v28 = vmax.f32 %v800_v21, 0.0  ;;  %v761_v29 = vunpack.c.l.bf16 %v744_v24 }
 0x2de   :  { %v3747_v30 = vadd.f32 %v3728_v61, %v767_v22  ;;  %v809_v31 = vadd.f32 %v3732_v62, %v768_v23  ;;  %v762_v32 = vunpack.c.h.bf16 %v744_v24  ;;  %v754_v33 = vld [vmem:[#allocation2 + $0x48] sm:$0xff]  ;;  %739 = vst [vmem:[#allocation2 + $0x3c] sm:$0xf] %v2970_v25  ;;  %v3387_v23 = vld [vmem:[#allocation7 + $0x218] ss:$12 sps:$4 sm:$0xff]  }
 0x2df   :  { %931 = vst [vmem:[#allocation2 + $0x18] sm:$0xff] %v2977_v26  ;;  %v2973_v34 = vpack.c.bf16 %v824_v28, %v823_v27  ;;  %v802_v35 = vadd.f32 %v3728_v61, %v761_v29  ;;  %v776_v36 = vunpack.c.l.bf16 %v754_v33  ;;  %v777_v37 = vunpack.c.h.bf16 %v754_v33  ;;  %v3390_v29 = vld [vmem:[#allocation7 + $0x1d0] ss:$12 sps:$4 sm:$0xff]   ;;  %v3782_v33 = vld [vmem:[%s3895_s1] sm:$0xff]  }
 0x2e0   :  { %v832_v38 = vmax.f32 %v3747_v30, 0.0  ;;  %v833_v39 = vmax.f32 %v809_v31, 0.0  ;;  %v803_v40 = vadd.f32 %v3732_v62, %v762_v32  ;;  %v750_v41 = vld [vmem:[#allocation2 + $0x30] sm:$0xff]  ;;  %v3393_v32 = vld [vmem:[#allocation7 + $0x188] ss:$12 sps:$4 sm:$0xff]   ;;  %3907 = vst [vmem:[#allocation14_spill] sm:$0xff] %v3782_v33 }
 0x2e1   :  { %927 = vst [vmem:[#allocation2] sm:$0xff] %v2973_v34  ;;  %v826_v42 = vmax.f32 %v802_v35, 0.0  ;;  %v3754_v43 = vadd.f32 %v3728_v61, %v776_v36  ;;  %v3757_v44 = vadd.f32 %v3732_v62, %v777_v37  ;;  %v770_v45 = vunpack.c.l.bf16 %v750_v41  ;;  %v3391_v31 = vld [vmem:[#allocation7 + $0x1b8] ss:$12 sps:$4 sm:$0xff]  }
 0x2e2   :  { %v2979_v46 = vpack.c.bf16 %v833_v39, %v832_v38  ;;  %v827_v48 = vmax.f32 %v803_v40, 0.0  ;;  %v771_v49 = vunpack.c.h.bf16 %v750_v41  ;;  %v3452_v22 = vpack.c.bf16 %v833_v39, %v830_v19 }
 0x2e3   :  { %v841_v50 = vmax.f32 %v3754_v43, 0.0  ;;  %v842_v51 = vmax.f32 %v3757_v44, 0.0  ;;  %v811_v52 = vadd.f32 %v3728_v61, %v770_v45  ;;  %v756_v53 = vld [vmem:[#allocation2 + $0x54] sm:$0xff]  ;;  %v3450_v14 = vpack.c.bf16 %v826_v42, %v823_v27 }
 0x2e4   :  { %933 = vst [vmem:[#allocation2 + $0x24] sm:$0xff] %v2979_v46  ;;  %v2975_v54 = vpack.c.bf16 %v827_v48, %v826_v42  ;;  %v812_v55 = vadd.f32 %v3732_v62, %v771_v49  ;;  %v779_v60 = vunpack.c.l.bf16 %v756_v53  ;;  %v780_v63 = vunpack.c.h.bf16 %v756_v53 }
 0x2e5   :  { %v2985_v56 = vpack.c.bf16 %v842_v51, %v841_v50  ;;  %v835_v1 = vmax.f32 %v811_v52, 0.0  ;;  %v752_v2 = vld [vmem:[#allocation2 + $0x3c] sm:$0xff]  ;;  %v3451_v15 = vpack.c.bf16 %v827_v48, %v824_v28 }
 0x2e6   :  { %929 = vst [vmem:[#allocation2 + $0xc] sm:$0xff] %v2975_v54  ;;  %v836_v57 = vmax.f32 %v812_v55, 0.0  ;;  %v820_v3 = vadd.f32 %v3728_v61, %v779_v60  ;;  %v821_v4 = vadd.f32 %v3732_v62, %v780_v63  ;;  %v773_v5 = vunpack.c.l.bf16 %v752_v2  ;;  %v3389_v28 = vld [vmem:[#allocation7 + $0x1e8] ss:$12 sps:$4 sm:$0xff]  }
 0x2e7   :  { %939 = vst [vmem:[#allocation2 + $0x48] sm:$0xff] %v2985_v56  ;;  %v774_v13 = vunpack.c.h.bf16 %v752_v2  ;;  %1552 = vmatprep.mubr.bf16.mxu1 %v3451_v15  ;;  %1698 = vmatprep.mubr.bf16.mxu0 %v3451_v15 }
 0x2e8   :  { %v2981_v9 = vpack.c.bf16 %v836_v57, %v835_v1  ;;  %v844_v17 = vmax.f32 %v820_v3, 0.0  ;;  %v845_v16 = vmax.f32 %v821_v4, 0.0  ;;  %v814_v20 = vadd.f32 %v3728_v61, %v773_v5  ;;  %1553 = vmatmul.mubr.bf16.vlgmr.msra.gmra.mxu1 %v3450_v14  ;;  %1699 = vmatmul.mubr.bf16.vlgmr.msra.gmra.mxu0 %v3450_v14  ;;  %v3388_v61 = vld [vmem:[#allocation7 + $0x200] ss:$12 sps:$4 sm:$0xff]  }
 0x2e9   :  { %v815_v21 = vadd.f32 %v3732_v62, %v774_v13  ;;  %1562 = vmatprep.mubr.bf16.mxu1 %v3452_v22  ;;  %1706 = vmatprep.mubr.bf16.mxu0 %v3452_v22  ;;  %v3453_v62 = vpack.c.bf16 %v832_v38, %v829_v18 }
 0x2ea   :  { %935 = vst [vmem:[#allocation2 + $0x30] sm:$0xff] %v2981_v9  ;;  %v2987_v24 = vpack.c.bf16 %v845_v16, %v844_v17  ;;  %v838_v25 = vmax.f32 %v814_v20, 0.0  ;;  %3204 = vmatpush3.bf16.msra.mxu1 %v3723_v47  ;;  %v3456_v30 = vpack.c.bf16 %v845_v16, %v842_v51  ;;  %v3457_v18 = vpack.c.bf16 %v844_v17, %v841_v50  ;;  %v1055_v17 = vld [vmem:[%s3900_s6] sm:$0x7] }
 0x2eb   :  { %v839_v26 = vmax.f32 %v815_v21, 0.0  ;;  %3205 = vmatprep.subr.bf16.mxu1 %v3387_v23  ;;  %v1064_v21 = vrot.slane %v1055_v17, %v3658_v12 }
 0x2ec   :  { %941 = vst [vmem:[#allocation2 + $0x54] sm:$0xff] %v2987_v24  ;;  %v3455_v47 = vpack.c.bf16 %v838_v25, %v835_v1  ;;  %v3823_v24 = vrot.slane %v1055_v17, %v3691_v59 }
 0x2ed   :  { %v2983_v27 = vpack.c.bf16 %v839_v26, %v838_v25  ;;  %v3454_v19 = vpack.c.bf16 %v839_v26, %v836_v57  ;;  %v1060_v26 = vrot.slane %v1055_v17, %v3655_v11 }
 0x2ee   :  { %3206 = vmatpush3.bf16.msra.mxu1 %v3387_v23 }
 0x2ef   :  { %937 = vst [vmem:[#allocation2 + $0x3c] sm:$0xff] %v2983_v27  ;;  %3207 = vmatprep.subr.bf16.mxu1 %v3388_v61 }
 0x2f0   :  { %1563 = vmatmul.mubr.bf16.gmra.mxu1 %v3453_v62  ;;  %1707 = vmatmul.mubr.bf16.gmra.mxu0 %v3453_v62 }
 0x2f1   :  { %1572 = vmatprep.mubr.bf16.mxu1 %v3454_v19  ;;  %1714 = vmatprep.mubr.bf16.mxu0 %v3454_v19 }
 0x2f2   :  { %3208 = vmatpush3.bf16.msra.mxu1 %v3388_v61 }
 0x2f3   :  { %3209 = vmatprep.subr.bf16.mxu1 %v3389_v28 }
 0x2f6   :  { %3210 = vmatpush3.bf16.msra.mxu1 %v3389_v28 }
 0x2f7   :  { %3211 = vmatprep.subr.bf16.mxu1 %v3390_v29 }
 0x2f8   :  { %1573 = vmatmul.mubr.bf16.gmra.mxu1 %v3455_v47  ;;  %1715 = vmatmul.mubr.bf16.gmra.mxu0 %v3455_v47 }
 0x2f9   :  { %1582 = vmatprep.mubr.bf16.mxu1 %v3456_v30  ;;  %1722 = vmatprep.mubr.bf16.mxu0 %v3456_v30 }
 0x2fa   :  { %3212 = vmatpush3.bf16.msra.mxu1 %v3390_v29 }
 0x2fb   :  { %3213 = vmatprep.subr.bf16.mxu1 %v3391_v31 }
 0x2fe   :  { %3214 = vmatpush3.bf16.msra.mxu1 %v3391_v31 }
 0x2ff   :  { %3215 = vmatprep.subr.bf16.mxu1 %v3392_v58 }
 0x300   :  { %1583 = vmatmul.mubr.bf16.gmra.mxu1 %v3457_v18  ;;  %1723 = vmatmul.mubr.bf16.gmra.mxu0 %v3457_v18 }
 0x301   :  { %3219 = vmatprep.mubr.bf16.mxu1 %v3708_v6  ;;  %1972 = vmatprep.mubr.bf16.mxu0 %v3904_v0  ;;  %v3786_v6 = vpop.f32.mrf.mxu0 }
 0x302   :  { %3216 = vmatpush3.bf16.msra.mxu1 %v3392_v58 }
 0x303   :  { %3217 = vmatprep.subr.bf16.mxu1 %v3393_v32  ;;  %v3788_v34 = vpop.f32.mrf.mxu0 }
 0x305   :  { %v3790_v35 = vpop.f32.mrf.mxu0 }
 0x306   :  { %3218 = vmatpush3.bf16.msra.mxu1 %v3393_v32 }
 0x307   :  { %v3792_v36 = vpop.f32.mrf.mxu0 }
 0x309   :  { %3220 = vmatmul.mubr.bf16.vlgmr.msra.gmra.mxu1 %v3712_v7  ;;  %v3794_v7 = vpop.f32.mrf.mxu0 }
 0x30a   :  { %3223 = vmatprep.mubr.bf16.mxu1 %v3716_v8 }
 0x30b   :  { %v3796_v8 = vpop.f32.mrf.mxu0 }
 0x311   :  { %3224 = vmatmul.mubr.bf16.gmra.mxu1 %v3720_v10  ;;  %v3798_v10 = vpop.f32.mrf.mxu0 }
 0x312   :  { %3235 = vmatprep.mubr.msk.bf16.mxu1 %vm463_vm1, %v3782_v33 }
 0x313   :  { %v3800_v37 = vpop.f32.mrf.mxu0 }
 0x315   :  { %v3802_v38 = vpop.f32.mrf.mxu0 }
 0x317   :  { %v3804_v39 = vpop.f32.mrf.mxu0 }
 0x319   :  { %v3806_v40 = vpop.f32.mrf.mxu0 }
 0x31b   :  { %v1653_v41 = vpop.f32.mrf.mxu0 }
 0x31d   :  { %v3808_v42 = vpop.f32.mrf.mxu0 }
 0x31f   :  { %v1659_v43 = vpop.f32.mrf.mxu0 }
 0x321   :  { %v1661_v44 = vpop.f32.mrf.mxu0 }
 0x323   :  { %v3810_v45 = vpop.f32.mrf.mxu0 }
 0x3a8   :  { %v3812_v46 = vpop.f32.mrf.mxu1  ;;  %v3081_v48 = vpop.f32.mrf.mxu0 }
 0x3aa   :  { %v1556_v49 = vpop.f32.mrf.mxu1  ;;  %v3082_v50 = vpop.f32.mrf.mxu0 }
 0x3ab   :  { %v3083_v22 = vadd.f32 %v3082_v50, %v3081_v48  ;;  %v3826_v61 = vadd.f32 %v1556_v49, %v1064_v21 }
 0x3ac   :  { %v1558_v51 = vpop.f32.mrf.mxu1  ;;  %v3084_v52 = vpop.f32.mrf.mxu0 }
 0x3ad   :  { %v1559_v28 = vadd.f32 %v1558_v51, %v1060_v26  ;;  %v1701_v31 = vadd.f32 %v3083_v22, %v3823_v24 }
 0x3ae   :  { %v1560_v53 = vpop.f32.mrf.mxu1  ;;  %v3085_v54 = vpop.f32.mrf.mxu0 }
 0x3af   :  { %v1561_v12 = vadd.f32 %v1560_v53, %v1064_v21  ;;  %v3086_v48 = vadd.f32 %v3085_v54, %v3084_v52 }
 0x3b0   :  { %v1564_v55 = vpop.f32.mrf.mxu1  ;;  %v3087_v60 = vpop.f32.mrf.mxu0 }
 0x3b1   :  { %v1565_v51 = vadd.f32 %v1564_v55, %v1060_v26 }
 0x3b2   :  { %v1566_v63 = vpop.f32.mrf.mxu1  ;;  %v3088_v56 = vpop.f32.mrf.mxu0 }
 0x3b3   :  { %v3089_v29 = vadd.f32 %v3088_v56, %v3087_v60  ;;  %v1567_v50 = vadd.f32 %v1566_v63, %v1064_v21 }
 0x3b4   :  { %v1568_v1 = vpop.f32.mrf.mxu1  ;;  %v3090_v2 = vpop.f32.mrf.mxu0 }
 0x3b5   :  { %v1569_v0 = vadd.f32 %v1568_v1, %v1060_v26  ;;  %v1640_v1 = vadd.f32 %v3796_v8, %v1567_v50  ;;  %v1555_v8 = vadd.f32 %v3812_v46, %v1060_v26  ;;  %v1630_v46 = vadd.f32 %v3788_v34, %v3826_v61 }
 0x3b6   :  { %v1570_v57 = vpop.f32.mrf.mxu1  ;;  %v3091_v3 = vpop.f32.mrf.mxu0 }
 0x3b7   :  { %v1571_v11 = vadd.f32 %v1570_v57, %v1064_v21  ;;  %v3092_v60 = vadd.f32 %v3091_v3, %v3090_v2 }
 0x3b8   :  { %v1574_v4 = vpop.f32.mrf.mxu1  ;;  %v3093_v5 = vpop.f32.mrf.mxu0 }
 0x3b9   :  { %v1575_v49 = vadd.f32 %v1574_v4, %v1060_v26 }
 0x3ba   :  { %v1576_v13 = vpop.f32.mrf.mxu1  ;;  %v3094_v14 = vpop.f32.mrf.mxu0 }
 0x3bb   :  { %v1577_v47 = vadd.f32 %v1576_v13, %v1064_v21  ;;  %v1709_v13 = vadd.f32 %v3089_v29, %v3823_v24 }
 0x3bc   :  { %v1578_v15 = vpop.f32.mrf.mxu1  ;;  %v3814_v9 = vpop.f32.mrf.mxu0 }
 0x3bd   :  { %v1579_v58 = vadd.f32 %v1578_v15, %v1060_v26  ;;  %v1650_v56 = vadd.f32 %v3804_v39, %v1577_v47  ;;  %v1648_v39 = vadd.f32 %v3802_v38, %v1575_v49  ;;  %v1634_v38 = vadd.f32 %v3792_v36, %v1561_v12 }
 0x3be   :  { %v1580_v16 = vpop.f32.mrf.mxu1  ;;  %v3819_v20 = vpop.f32.mrf.mxu0 }
 0x3bf   :  { %v1581_v62 = vadd.f32 %v1580_v16, %v1064_v21  ;;  %v1652_v53 = vadd.f32 %v3806_v40, %v1579_v58  ;;  %v1628_v58 = vadd.f32 %v3786_v6, %v1555_v8 }
 0x3c0   :  { %v1584_v23 = vpop.f32.mrf.mxu1  ;;  %v3099_v25 = vpop.f32.mrf.mxu0 }
 0x3c1   :  { %v1585_v18 = vadd.f32 %v1584_v23, %v1060_v26  ;;  %v1654_v33 = vadd.f32 %v1653_v41, %v1581_v62  ;;  %v1642_v41 = vadd.f32 %v3798_v10, %v1569_v0  ;;  %v3461_v12 = vpack.c.bf16 %v1652_v53, %v1648_v39  ;;  %v3411_v53 = vld [vmem:[#allocation9 + $0x38] sm:$0xff]  }
 0x3c2   :  { %v1586_v27 = vpop.f32.mrf.mxu1  ;;  %v3100_v32 = vpop.f32.mrf.mxu0 }
 0x3c3   :  { %v1587_v19 = vadd.f32 %v1586_v27, %v1064_v21  ;;  %v1658_v15 = vadd.f32 %v3808_v42, %v1585_v18  ;;  %v3101_v57 = vadd.f32 %v3100_v32, %v3099_v25  ;;  %v1712_v42 = vadd.f32 %v3092_v60, %v3823_v24  ;;  %v3867_v60 = vld [vmem:[%s3895_s1 + $0x10] sm:$0xff]  }
 0x3c4   :  { %v1588_v30 = vpop.f32.mrf.mxu1  ;;  %v3102_v52 = vpop.f32.mrf.mxu0  ;;  %v1638_v25 = vadd.f32 %v3794_v7, %v1565_v51  ;;  %v3098_v7 = vadd.f32 %v3819_v20, %v3814_v9  ;;  %v3909_v51 = vmov 0  }
 0x3c5   :  { %v1589_v59 = vadd.f32 %v1588_v30, %v1060_v26  ;;  %v1660_v16 = vadd.f32 %v1659_v43, %v1587_v19  ;;  %v1644_v43 = vadd.f32 %v3800_v37, %v1571_v11  ;;  %v1704_v37 = vadd.f32 %v3086_v48, %v3823_v24 }
 0x3c6   :  { %v1590_v17 = vpop.f32.mrf.mxu1  ;;  %v3103_v4 = vpop.f32.mrf.mxu0  ;;  %v3460_v19 = vpack.c.bf16 %v1654_v33, %v1650_v56  ;;  %v1725_v47 = vadd.f32 %v3101_v57, %v3823_v24  ;;  %v1632_v26 = vadd.f32 %v3790_v35, %v1559_v28  ;;  %v1720_v9 = vadd.f32 %v3098_v7, %v3823_v24  ;;  %v3875_v56 = vld [vmem:[%s3895_s1 + $0x18] sm:$0xff]  }
 0x3c7   :  { %v1591_v27 = vadd.f32 %v1590_v17, %v1064_v21  ;;  %v1662_v22 = vadd.f32 %v1661_v44, %v1589_v59  ;;  %v3095_v44 = vadd.f32 %v3094_v14, %v3093_v5  ;;  %v3104_v29 = vadd.f32 %v3103_v4, %v3102_v52  ;;  %v3414_v52 = vld [vmem:[#allocation9 + $0x68] sm:$0xff]  }
 0x3c8   :  { %v3462_v32 = vpack.c.bf16 %v1644_v43, %v1640_v1  ;;  %v3463_v20 = vpack.c.bf16 %v1642_v41, %v1638_v25  ;;  %v3464_v11 = vpack.c.bf16 %v1634_v38, %v1630_v46  ;;  %v3398_v46 = vld [vmem:[#allocation9 + $0xb8] sm:$0xff]  }
 0x3c9   :  { %v1664_v54 = vadd.f32 %v3810_v45, %v1591_v27  ;;  %v3221_v63 = vpop.f32.mrf.mxu1  ;;  %v3459_v23 = vpack.c.bf16 %v1662_v22, %v1658_v15  ;;  %v1717_v36 = vadd.f32 %v3095_v44, %v3823_v24  ;;  %v1728_v35 = vadd.f32 %v3104_v29, %v3823_v24  ;;  %v3908_v27 = vld [vmem:[#allocation14_spill] sm:$0xff]  ;;  %v3859_v24 = vld [vmem:[%s3895_s1 + $0x8] sm:$0xff]  }
 0x3ca   :  { %v1774_v55 = vadd.f32 %v3221_v63, %v1709_v13  ;;  %v3410_v13 = vld [vmem:[#allocation9 + $0x78] sm:$0xff]   ;;  %v3412_v15 = vld [vmem:[#allocation9 + $0x70] sm:$0xff]  }
 0x3cb   :  { %v1765_v2 = vpop.f32.mrf.mxu1  ;;  %v3458_v45 = vpack.c.bf16 %v1664_v54, %v1660_v16  ;;  %v3465_v16 = vpack.c.bf16 %v1632_v26, %v1628_v58  ;;  %v3413_v22 = vld [vmem:[#allocation9 + $0x30] sm:$0xff]   ;;  %v3415_v54 = vld [vmem:[#allocation9 + $0x28] sm:$0xff]   ;;  %v3406_v58 = vld [vmem:[#allocation9 + $0x80] sm:$0xff]  }
 0x3cc   :  { %v2994_v3 = vpack.c.bf16 %v1774_v55, %v1774_v55  ;;  %v1766_v40 = vadd.f32 %v1765_v2, %v1701_v31  ;;  %v3399_v26 = vld [vmem:[#allocation9 + $0xb0] sm:$0xff]  }
 0x3cd   :  { %v3222_v21 = vpop.f32.mrf.mxu1  ;;  %1948 = vmatprep.subr.bf16.mxu0 %v3458_v45 }
 0x3ce   :  { %1881 = vst [vmem:[#allocation3 + $0x20] sm:$0xf] %v2994_v3  ;;  %v2990_v0 = vpack.c.bf16 %v1766_v40, %v1766_v40  ;;  %v1777_v10 = vadd.f32 %v3222_v21, %v1712_v42  ;;  %1949 = vmatpush1.bf16.msra.mxu0 %v3459_v23 }
 0x3cf   :  { %v1768_v62 = vpop.f32.mrf.mxu1  ;;  %1950 = vmatprep.subr.bf16.mxu0 %v3460_v19 }
 0x3d0   :  { %1877 = vst [vmem:[#allocation3 + $0x8] sm:$0xf] %v2990_v0  ;;  %v2996_v5 = vpack.c.bf16 %v1777_v10, %v1777_v10  ;;  %v1769_v14 = vadd.f32 %v1768_v62, %v1704_v37 }
 0x3d1   :  { %v3225_v30 = vpop.f32.mrf.mxu1 }
 0x3d2   :  { %1883 = vst [vmem:[#allocation3 + $0x2c] sm:$0xf] %v2996_v5  ;;  %v2992_v33 = vpack.c.bf16 %v1769_v14, %v1769_v14  ;;  %v1790_v31 = vadd.f32 %v3225_v30, %v1725_v47  ;;  %1951 = vmatpush1.bf16.msra.mxu0 %v3461_v12  ;;  %v3400_v30 = vld [vmem:[#allocation9 + $0xa8] sm:$0xff]  }
 0x3d3   :  { %v1781_v18 = vpop.f32.mrf.mxu1  ;;  %1952 = vmatprep.subr.bf16.mxu0 %v3462_v32  ;;  %v3405_v12 = vld [vmem:[#allocation9 + $0x88] sm:$0xff]  }
 0x3d4   :  { %1879 = vst [vmem:[#allocation3 + $0x14] sm:$0xf] %v2992_v33  ;;  %v3002_v59 = vpack.c.bf16 %v1790_v31, %v1790_v31  ;;  %v1782_v34 = vadd.f32 %v1781_v18, %v1717_v36  ;;  %v3402_v36 = vld [vmem:[#allocation9 + $0xa0] sm:$0xff]   ;;  %v3403_v33 = vld [vmem:[#allocation9 + $0x98] sm:$0xff]   ;;  %v3404_v31 = vld [vmem:[#allocation9 + $0x90] sm:$0xff]  }
 0x3d5   :  { %v3226_v61 = vpop.f32.mrf.mxu1 }
 0x3d6   :  { %1889 = vst [vmem:[#allocation3 + $0x50] sm:$0xf] %v3002_v59  ;;  %v2998_v28 = vpack.c.bf16 %v1782_v34, %v1782_v34  ;;  %v1793_v48 = vadd.f32 %v3226_v61, %v1728_v35  ;;  %1953 = vmatpush1.bf16.msra.mxu0 %v3463_v20  ;;  %v3416_v34 = vld [vmem:[#allocation9 + $0x60] sm:$0xff]   ;;  %v3418_v61 = vld [vmem:[#allocation9 + $0x58] sm:$0xff]   ;;  %v3422_v20 = vld [vmem:[#allocation9 + $0x48] sm:$0xff]  }
 0x3d7   :  { %v1784_v50 = vpop.f32.mrf.mxu1  ;;  %1954 = vmatprep.subr.bf16.mxu0 %v3464_v11  ;;  %v3417_v35 = vld [vmem:[#allocation9 + $0x20] sm:$0xff]  }
 0x3d8   :  { %1885 = vst [vmem:[#allocation3 + $0x38] sm:$0xf] %v2998_v28  ;;  %v3004_v6 = vpack.c.bf16 %v1793_v48, %v1793_v48  ;;  %v1785_v17 = vadd.f32 %v1784_v50, %v1720_v9  ;;  %v3419_v28 = vld [vmem:[#allocation9 + $0x18] sm:$0xff]   ;;  %v3420_v48 = vld [vmem:[#allocation9 + $0x50] sm:$0xff]   ;;  %v3423_v50 = vld [vmem:[#allocation9 + $0x8] sm:$0xff]  }
 0x3d9   :  { %v3407_v18 = vld [vmem:[#allocation3 + $0x20] ss:$12 sps:$4 sm:$0xff]   ;;  %v3424_v11 = vld [vmem:[#allocation9 + $0x40] sm:$0xff]  }
 0x3da   :  { %1891 = vst [vmem:[#allocation3 + $0x5c] sm:$0xf] %v3004_v6  ;;  %v3000_v49 = vpack.c.bf16 %v1785_v17, %v1785_v17  ;;  %1955 = vmatpush1.bf16.msra.mxu0 %v3465_v16  ;;  %v3421_v9 = vld [vmem:[#allocation9 + $0x10] sm:$0xff]   ;;  %v3425_v6 = vld [vmem:[#allocation9] sm:$0xff]  }
 0x3db   :  { %3125 = vmatprep.subr.bf16.mxu0 %v3410_v13  ;;  %v3401_v7 = vld [vmem:[#allocation3 + $0x8] ss:$12 sps:$4 sm:$0xff]  }
 0x3dc   :  { %1887 = vst [vmem:[#allocation3 + $0x44] sm:$0xf] %v3000_v49 }
 0x3dd   :  { %2868 = vmatmul.mubr.msk.bf16.vlgmr.msra.gmra.mxu0 %vm463_vm1, %v3908_v27 }
 0x3de   :  { %1982 = vmatprep.mubr.bf16.mxu0 %v3909_v51  ;;  %3126 = vmatpush3.bf16.msra.mxu0 %v3411_v53 }
 0x3df   :  { %3127 = vmatprep.subr.bf16.mxu0 %v3412_v15 }
 0x3e1   :  { %v3409_v59 = vld [vmem:[#allocation3 + $0x50] ss:$12 sps:$4 sm:$0xff]  }
 0x3e2   :  { %3128 = vmatpush3.bf16.msra.mxu0 %v3413_v22 }
 0x3e3   :  { %3129 = vmatprep.subr.bf16.mxu0 %v3414_v52  ;;  %v3408_v32 = vld [vmem:[#allocation3 + $0x38] ss:$12 sps:$4 sm:$0xff]  }
 0x3e5   :  { %2869 = vmatmul.mubr.msk.bf16.gmra.mxu0 %vm463_vm1, %v3859_v24 }
 0x3e6   :  { %1992 = vmatprep.mubr.bf16.mxu0 %v3909_v51  ;;  %3130 = vmatpush3.bf16.msra.mxu0 %v3415_v54 }
 0x3e7   :  { %3131 = vmatprep.subr.bf16.mxu0 %v3416_v34 }
 0x3ea   :  { %3132 = vmatpush3.bf16.msra.mxu0 %v3417_v35 }
 0x3eb   :  { %3133 = vmatprep.subr.bf16.mxu0 %v3418_v61 }
 0x3ed   :  { %2870 = vmatmul.mubr.msk.bf16.gmra.mxu0 %vm463_vm1, %v3867_v60 }
 0x3ee   :  { %2002 = vmatprep.mubr.bf16.mxu0 %v3909_v51  ;;  %3134 = vmatpush3.bf16.msra.mxu0 %v3419_v28 }
 0x3ef   :  { %3135 = vmatprep.subr.bf16.mxu0 %v3420_v48 }
 0x3f2   :  { %3136 = vmatpush3.bf16.msra.mxu0 %v3421_v9 }
 0x3f3   :  { %3137 = vmatprep.subr.bf16.mxu0 %v3422_v20 }
 0x3f5   :  { %2871 = vmatmul.mubr.msk.bf16.gmra.mxu0 %vm463_vm1, %v3875_v56 }
 0x3f6   :  { %3138 = vmatpush3.bf16.msra.mxu0 %v3423_v50 }
 0x3f7   :  { %3139 = vmatprep.subr.bf16.mxu0 %v3424_v11 }
 0x3fa   :  { %3140 = vmatpush3.bf16.msra.mxu0 %v3425_v6 }
 0x49d   :  { %v1974_v63 = vpop.f32.mrf.mxu0 }
 0x49f   :  { %v1976_v1 = vpop.f32.mrf.mxu0 }
 0x4a0   :  { %v3005_v41 = vpack.c.bf16 %v1976_v1, %v1974_v63 }
 0x4a1   :  { %v1978_v43 = vpop.f32.mrf.mxu0 }
 0x4a2   :  { %2061 = vst [vmem:[#allocation3] sm:$0xff] %v3005_v41 }
 0x4a3   :  { %v1980_v55 = vpop.f32.mrf.mxu0 }
 0x4a4   :  { %v3006_v39 = vpack.c.bf16 %v1980_v55, %v1978_v43 }
 0x4a5   :  { %v1984_v2 = vpop.f32.mrf.mxu0 }
 0x4a6   :  { %2062 = vst [vmem:[#allocation3 + $0xc] sm:$0xff] %v3006_v39 }
 0x4a7   :  { %v1986_v57 = vpop.f32.mrf.mxu0 }
 0x4a8   :  { %v3007_v3 = vpack.c.bf16 %v1986_v57, %v1984_v2 }
 0x4a9   :  { %v1988_v40 = vpop.f32.mrf.mxu0 }
 0x4aa   :  { %2063 = vst [vmem:[#allocation3 + $0x18] sm:$0xff] %v3007_v3 }
 0x4ab   :  { %v1990_v42 = vpop.f32.mrf.mxu0 }
 0x4ac   :  { %v3008_v44 = vpack.c.bf16 %v1990_v42, %v1988_v40 }
 0x4ad   :  { %v1994_v4 = vpop.f32.mrf.mxu0  ;;  %v3397_v47 = vld [vmem:[#allocation3] ss:$12 sps:$4 sm:$0xff]   ;;  %v3428_v43 = vld [vmem:[#allocation3 + $0x4] ss:$12 sps:$4 sm:$0xff]  }
 0x4ae   :  { %2064 = vst [vmem:[#allocation3 + $0x24] sm:$0xff] %v3008_v44  ;;  %2517 = vmatprep.mubr.bf16.mxu0 %v3428_v43 }
 0x4af   :  { %v1996_v21 = vpop.f32.mrf.mxu0 }
 0x4b0   :  { %v3009_v45 = vpack.c.bf16 %v1996_v21, %v1994_v4 }
 0x4b1   :  { %v1998_v23 = vpop.f32.mrf.mxu0 }
 0x4b2   :  { %2065 = vst [vmem:[#allocation3 + $0x30] sm:$0xff] %v3009_v45 }
 0x4b3   :  { %v2000_v8 = vpop.f32.mrf.mxu0 }
 0x4b4   :  { %v3010_v0 = vpack.c.bf16 %v2000_v8, %v1998_v23  ;;  %v2896_v23 = vld [vmem:[%s3902_s8] ss:$0 sm:$0xff]  ;;  %s3560_s8 = smov [#allocation10]  }
 0x4b5   :  { %v2004_v10 = vpop.f32.mrf.mxu0  ;;  %v3396_v14 = vld [vmem:[#allocation3 + $0x18] ss:$12 sps:$4 sm:$0xff]   ;;  %v3429_v55 = vld [vmem:[#allocation3 + $0x1c] ss:$12 sps:$4 sm:$0xff]   ;;  %s2660_s30 = sshll.u32 %s3560_s8, 4  ;;  %s2661_s30 = int_to_ptr.vmem [resolvable:$true] %s2660_s30 }
 0x4b6   :  { %2066 = vst [vmem:[#allocation3 + $0x3c] sm:$0xff] %v3010_v0  ;;  %s3526_s10 = scalar_lea.vmem %s2661_s30, 512  ;;  %p3531_p2 = scmp.lt.s32.totalorder %s2661_s30, %s2661_s30 }
 0x4b7   :  { %v2006_v37 = vpop.f32.mrf.mxu0  ;;  %p3527_p1 = scmp.ne.s32.totalorder %s2661_s30, %s3526_s10  ;;  %p3532_p3 = scmp.lt.s32.totalorder %s3526_s10, %s3526_s10 }
 0x4b8   :  { %v3011_v38 = vpack.c.bf16 %v2006_v37, %v2004_v10 }
 0x4b9   :  { %v2008_v25 = vpop.f32.mrf.mxu0  ;;  %p3533_p4 = por %p3532_p3, %p3531_p2 }
 0x4ba   :  { %2067 = vst [vmem:[#allocation3 + $0x48] sm:$0xff] %v3011_v38 }
 0x4bb   :  { %v2010_v62 = vpop.f32.mrf.mxu0  ;;  %p3534_p5 = pnand %p3533_p4, %p3527_p1 }
 0x4bc   :  { %v3012_v19 = vpack.c.bf16 %v2010_v62, %v2008_v25 }
 0x4bd   :  { %v3395_v5 = vld [vmem:[#allocation3 + $0x30] ss:$12 sps:$4 sm:$0xff]   ;;  %v3432_v2 = vld [vmem:[#allocation3 + $0x34] ss:$12 sps:$4 sm:$0xff]  }
 0x4be   :  { %2068 = vst [vmem:[#allocation3 + $0x54] sm:$0xff] %v3012_v19 }
 0x4c5   :  { %v3394_v29 = vld [vmem:[#allocation3 + $0x48] ss:$12 sps:$4 sm:$0xff]   ;;  %v3435_v3 = vld [vmem:[#allocation3 + $0x4c] ss:$12 sps:$4 sm:$0xff]  }
 0x4c6   :  { %3227 = vmatprep.subr.bf16.mxu1 %v3394_v29 }
 0x4c7   :  { %3228 = vmatpush3.bf16.msra.mxu1 %v3394_v29 }
 0x4c8   :  { %3229 = vmatprep.subr.bf16.mxu1 %v3395_v5 }
 0x4cb   :  { %3230 = vmatpush3.bf16.msra.mxu1 %v3395_v5 }
 0x4cc   :  { %3231 = vmatprep.subr.bf16.mxu1 %v3396_v14 }
 0x4cf   :  { %3232 = vmatpush3.bf16.msra.mxu1 %v3396_v14 }
 0x4d0   :  { %3233 = vmatprep.subr.bf16.mxu1 %v3397_v47 }
 0x4d3   :  { %3234 = vmatpush3.bf16.msra.mxu1 %v3397_v47 }
 0x4d4   :  { %3243 = vmatprep.subr.bf16.mxu1 %v3398_v46 }
 0x4d6   :  { %3236 = vmatmul.mubr.msk.bf16.vlgmr.msra.gmra.mxu1 %vm463_vm1, %v3859_v24 }
 0x4d7   :  { %3244 = vmatpush3.bf16.msra.mxu1 %v3398_v46  ;;  %3239 = vmatprep.mubr.msk.bf16.mxu1 %vm463_vm1, %v3867_v60 }
 0x4d8   :  { %3245 = vmatprep.subr.bf16.mxu1 %v3399_v26 }
 0x4db   :  { %3246 = vmatpush3.bf16.msra.mxu1 %v3399_v26 }
 0x4dc   :  { %3247 = vmatprep.subr.bf16.mxu1 %v3400_v30 }
 0x4de   :  { %3240 = vmatmul.mubr.msk.bf16.gmra.mxu1 %vm463_vm1, %v3875_v56 }
 0x4df   :  { %3248 = vmatpush3.bf16.msra.mxu1 %v3400_v30  ;;  %3259 = vmatprep.mubr.bf16.mxu1 %v3401_v7 }
 0x4e0   :  { %3249 = vmatprep.subr.bf16.mxu1 %v3402_v36 }
 0x4e3   :  { %3250 = vmatpush3.bf16.msra.mxu1 %v3402_v36 }
 0x4e4   :  { %3251 = vmatprep.subr.bf16.mxu1 %v3403_v33 }
 0x4e7   :  { %3252 = vmatpush3.bf16.msra.mxu1 %v3403_v33 }
 0x4e8   :  { %3253 = vmatprep.subr.bf16.mxu1 %v3404_v31 }
 0x4eb   :  { %3254 = vmatpush3.bf16.msra.mxu1 %v3404_v31 }
 0x4ec   :  { %3255 = vmatprep.subr.bf16.mxu1 %v3405_v12 }
 0x4ef   :  { %3256 = vmatpush3.bf16.msra.mxu1 %v3405_v12 }
 0x4f0   :  { %3257 = vmatprep.subr.bf16.mxu1 %v3406_v58 }
 0x4f3   :  { %3258 = vmatpush3.bf16.msra.mxu1 %v3406_v58 }
 0x4f6   :  { %3260 = vmatmul.mubr.bf16.vlgmr.msra.gmra.mxu1 %v3407_v18 }
 0x4f7   :  { %3263 = vmatprep.mubr.bf16.mxu1 %v3408_v32 }
 0x4fe   :  { %3264 = vmatmul.mubr.bf16.gmra.mxu1 %v3409_v59 }
 0x596   :  { %v3237_v17 = vpop.f32.mrf.mxu1 }
 0x597   :  { %v3015_v49 = vpack.c.bf16 %v3237_v17, %v3237_v17 }
 0x598   :  { %v2135_v16 = vpop.f32.mrf.mxu1 }
 0x599   :  { %2200 = vst [vmem:[#allocation3 + $0x18] sm:$0xf] %v3015_v49  ;;  %v3013_v27 = vpack.c.bf16 %v2135_v16, %v2135_v16 }
 0x59a   :  { %v3238_v51 = vpop.f32.mrf.mxu1 }
 0x59b   :  { %2198 = vst [vmem:[#allocation3] sm:$0xf] %v3013_v27  ;;  %v3016_v24 = vpack.c.bf16 %v3238_v51, %v3238_v51 }
 0x59c   :  { %v2138_v60 = vpop.f32.mrf.mxu1 }
 0x59d   :  { %2201 = vst [vmem:[#allocation3 + $0x24] sm:$0xf] %v3016_v24  ;;  %v3014_v56 = vpack.c.bf16 %v2138_v60, %v2138_v60 }
 0x59e   :  { %v3241_v13 = vpop.f32.mrf.mxu1 }
 0x59f   :  { %2199 = vst [vmem:[#allocation3 + $0xc] sm:$0xf] %v3014_v56  ;;  %v3019_v53 = vpack.c.bf16 %v3241_v13, %v3241_v13 }
 0x5a0   :  { %v2151_v15 = vpop.f32.mrf.mxu1 }
 0x5a1   :  { %2204 = vst [vmem:[#allocation3 + $0x48] sm:$0xf] %v3019_v53  ;;  %v3017_v22 = vpack.c.bf16 %v2151_v15, %v2151_v15 }
 0x5a2   :  { %v3242_v52 = vpop.f32.mrf.mxu1 }
 0x5a3   :  { %2202 = vst [vmem:[#allocation3 + $0x30] sm:$0xf] %v3017_v22  ;;  %v3020_v54 = vpack.c.bf16 %v3242_v52, %v3242_v52 }
 0x5a4   :  { %v2154_v63 = vpop.f32.mrf.mxu1  ;;  %v3431_v39 = vld [vmem:[#allocation3 + $0x18] ss:$12 sps:$4 sm:$0xff]  }
 0x5a5   :  { %2205 = vst [vmem:[#allocation3 + $0x54] sm:$0xf] %v3020_v54  ;;  %v3018_v1 = vpack.c.bf16 %v2154_v63, %v2154_v63 }
 0x5a6   :  { %v3426_v41 = vld [vmem:[#allocation3] ss:$12 sps:$4 sm:$0xff]  }
 0x5a7   :  { %2203 = vst [vmem:[#allocation3 + $0x3c] sm:$0xf] %v3018_v1  ;;  %2518 = vmatmul.mubr.bf16.vlgmr.msra.gmra.mxu0 %v3426_v41 }
 0x5a8   :  { %2525 = vmatprep.mubr.bf16.mxu0 %v3429_v55 }
 0x5ac   :  { %v3437_v40 = vld [vmem:[#allocation3 + $0x48] ss:$12 sps:$4 sm:$0xff]  }
 0x5ae   :  { %v3434_v57 = vld [vmem:[#allocation3 + $0x30] ss:$12 sps:$4 sm:$0xff]  }
 0x5af   :  { %2526 = vmatmul.mubr.bf16.gmra.mxu0 %v3431_v39 }
 0x5b0   :  { %2533 = vmatprep.mubr.bf16.mxu0 %v3432_v2 }
 0x5b6   :  { %v3261_v42 = vpop.f32.mrf.mxu1 }
 0x5b7   :  { %2534 = vmatmul.mubr.bf16.gmra.mxu0 %v3434_v57 }
 0x5b8   :  { %2541 = vmatprep.mubr.bf16.mxu0 %v3435_v3  ;;  %v2584_v4 = vpop.f32.mrf.mxu1 }
 0x5ba   :  { %v3262_v0 = vpop.f32.mrf.mxu1 }
 0x5bc   :  { %v2587_v19 = vpop.f32.mrf.mxu1 }
 0x5be   :  { %v3265_v30 = vpop.f32.mrf.mxu1 }
 0x5bf   :  { %2542 = vmatmul.mubr.bf16.gmra.mxu0 %v3437_v40 }
 0x5c0   :  { %v2600_v58 = vpop.f32.mrf.mxu1 }
 0x5c2   :  { %v3266_v28 = vpop.f32.mrf.mxu1 }
 0x5c4   :  { %v2603_v6 = vpop.f32.mrf.mxu1 }
 0x667   :  { %v3141_v44 = vpop.f32.mrf.mxu0 }
 0x669   :  { %v3142_v21 = vpop.f32.mrf.mxu0 }
 0x66a   :  { %v3143_v45 = vadd.f32 %v3142_v21, %v3141_v44 }
 0x66b   :  { %v3144_v8 = vpop.f32.mrf.mxu0 }
 0x66c   :  { %v2520_v37 = vadd.f32 %v3143_v45, %v2896_v23 }
 0x66d   :  { %v3145_v10 = vpop.f32.mrf.mxu0 }
 0x66e   :  { %v3146_v38 = vadd.f32 %v3145_v10, %v3144_v8  ;;  %v2585_v5 = vadd.f32 %v2584_v4, %v2520_v37 }
 0x66f   :  { %v3147_v25 = vpop.f32.mrf.mxu0 }
 0x670   :  { %v2523_v62 = vadd.f32 %v3146_v38, %v2896_v23 }
 0x671   :  { %v3148_v29 = vpop.f32.mrf.mxu0 }
 0x672   :  { %v2588_v14 = vadd.f32 %v2587_v19, %v2523_v62  ;;  %v3149_v47 = vadd.f32 %v3148_v29, %v3147_v25 }
 0x673   :  { %v3150_v46 = vpop.f32.mrf.mxu0 }
 0x674   :  { %v3032_v26 = vpack.c.bf16 %v2588_v14, %v2585_v5  ;;  %v2528_v7 = vadd.f32 %v3149_v47, %v2896_v23 }
 0x675   :  { %v3151_v36 = vpop.f32.mrf.mxu0 }
 0x676   :  { %3033 = vst [vmem:[#allocation10] sm:$0xff] %v3032_v26   ;;  %v3152_v33 = vadd.f32 %v3151_v36, %v3150_v46  ;;  %v2593_v32 = vadd.f32 %v3261_v42, %v2528_v7 }
 0x677   :  { %v3153_v31 = vpop.f32.mrf.mxu0 }
 0x678   :  { %v2531_v12 = vadd.f32 %v3152_v33, %v2896_v23 }
 0x679   :  { %v3154_v18 = vpop.f32.mrf.mxu0 }
 0x67a   :  { %v2596_v59 = vadd.f32 %v3262_v0, %v2531_v12  ;;  %v3155_v34 = vadd.f32 %v3154_v18, %v3153_v31 }
 0x67b   :  { %v3156_v35 = vpop.f32.mrf.mxu0 }
 0x67c   :  { %v3037_v61 = vpack.c.bf16 %v2596_v59, %v2593_v32  ;;  %v2536_v9 = vadd.f32 %v3155_v34, %v2896_v23 }
 0x67d   :  { %v3157_v48 = vpop.f32.mrf.mxu0 }
 0x67e   :  { %3049 = vst [vmem:[#allocation10 + $0x8] sm:$0xff] %v3037_v61   ;;  %v3158_v20 = vadd.f32 %v3157_v48, %v3156_v35  ;;  %v2601_v49 = vadd.f32 %v2600_v58, %v2536_v9 }
 0x67f   :  { %v3159_v50 = vpop.f32.mrf.mxu0 }
 0x680   :  { %v2539_v11 = vadd.f32 %v3158_v20, %v2896_v23 }
 0x681   :  { %v3160_v17 = vpop.f32.mrf.mxu0 }
 0x682   :  { %v2604_v16 = vadd.f32 %v2603_v6, %v2539_v11  ;;  %v3161_v27 = vadd.f32 %v3160_v17, %v3159_v50 }
 0x683   :  { %v3162_v51 = vpop.f32.mrf.mxu0 }
 0x684   :  { %v3042_v24 = vpack.c.bf16 %v2604_v16, %v2601_v49  ;;  %v2544_v56 = vadd.f32 %v3161_v27, %v2896_v23 }
 0x685   :  { %v3163_v60 = vpop.f32.mrf.mxu0 }
 0x686   :  { %3050 = vst [vmem:[#allocation10 + $0x10] sm:$0xff] %v3042_v24   ;;  %v3164_v13 = vadd.f32 %v3163_v60, %v3162_v51  ;;  %v2609_v15 = vadd.f32 %v3265_v30, %v2544_v56 }
 0x688   :  { %v2547_v53 = vadd.f32 %v3164_v13, %v2896_v23 }
 0x68a   :  { %v2612_v22 = vadd.f32 %v3266_v28, %v2547_v53 }
 0x68c   :  { %v3047_v52 = vpack.c.bf16 %v2612_v22, %v2609_v15 }
 0x68e   :  { %3051 = vst [vmem:[#allocation10 + $0x18] sm:$0xff] %v3047_v52  }
 0x68f   :  { %3537 = shalt.err (!%p3534_p5)
}
 0x690   :  { %2666 = dma.vmem_to_hbm [thread:$0]  %s2661_s30, 512, %s3903_s9, [#allocation6], %s3557_s5, %s3557_s5, %s3558_s24  }
 0x691   :  { %3550 = dma.done.wait [#allocation6], 512  }
 0x692   :  { %3551 = vsyncadd [#allocation6], 4294966784 }
 0x693   :  { %2670 = vsyncpa [#allocation5], 1 }
 0x694   :  { %2671 = vsyncpa [#allocation8], 1 }
 0x695   :  { %2672 = vsyncpa [#allocation6], 1 }

</bundles_post_ra>
